<compile_context>
chip_gen: v5e
topology: v5e:2x2
jax: 0.10.0
libtpu: 0.0.40
codegen_flags: <defaults>
</compile_context>

<pallas_src>
import math
import functools

import jax
import jax.numpy as jnp
from jax.experimental import pallas as pl
from jax.experimental.pallas import tpu as pltpu


_EPS = 1e-6
_VMEM_LIMIT = 64 * 1024 * 1024   # valid cap on v5e/v6e (128 MiB) and v7x (64 MiB)


# ------------------------------ tiling helpers ------------------------------

def _pick_sublane_tile(dim, target=256):
    """Largest tile <= target dividing dim that is a multiple of 8
    (falls back to the full dim for small / awkward sizes - never drops rows)."""
    if dim <= target:
        return dim
    for t in range(target, 7, -1):
        if dim % t == 0 and t % 8 == 0:
            return t
    return dim


def _pick_lane_tile(dim, target=512):
    """Largest tile <= target dividing dim that is a multiple of 128
    (falls back to the full dim for small / awkward sizes)."""
    if dim <= target:
        return dim
    for t in range(target, 127, -1):
        if dim % t == 0 and t % 128 == 0:
            return t
    return dim


def _cparams(dims):
    return pltpu.CompilerParams(dimension_semantics=dims,
                                vmem_limit_bytes=_VMEM_LIMIT)


# ----------------------------- Pallas kernels ------------------------------

def _rmsnorm_matmul_kernel(x_ref, g_ref, w_ref, o_ref, *, eps):
    # out = RMSNorm(x) @ W        x: (TM, D)   w: (D, TN)
    # Norm recompute per N tile is VPU filler fully hidden under the MXU
    # matmul, so no cross-tile caching is needed here (keeps both axes
    # megacore-parallel).
    x = x_ref[...].astype(jnp.float32)
    inv = jax.lax.rsqrt(jnp.mean(x * x, axis=-1, keepdims=True) + eps)
    h = (x * inv * g_ref[...].astype(jnp.float32)).astype(w_ref.dtype)
    o_ref[...] = jnp.dot(h, w_ref[...],
                         preferred_element_type=jnp.float32).astype(o_ref.dtype)


def _rmsnorm_matmul_t_kernel(x_ref, g_ref, w_ref, o_ref, *, eps):
    # out = RMSNorm(x) @ W^T      x: (TM, D)   w: (TN, D)  (no transpose copy)
    x = x_ref[...].astype(jnp.float32)
    inv = jax.lax.rsqrt(jnp.mean(x * x, axis=-1, keepdims=True) + eps)
    h = (x * inv * g_ref[...].astype(jnp.float32)).astype(w_ref.dtype)
    o_ref[...] = jax.lax.dot_general(
        h, w_ref[...], (((1,), (1,)), ((), ())),
        preferred_element_type=jnp.float32).astype(o_ref.dtype)


def _matmul_residual_kernel(x_ref, w_ref, r_ref, o_ref, acc_ref):
    # out = r + x @ W   with K tiled on grid axis 2 into a f32 accumulator.
    k = pl.program_id(2)

    @pl.when(k == 0)
    def _():
        acc_ref[...] = r_ref[...].astype(jnp.float32)

    acc_ref[...] += jnp.dot(x_ref[...], w_ref[...],
                            preferred_element_type=jnp.float32)

    @pl.when(k == pl.num_programs(2) - 1)
    def _():
        o_ref[...] = acc_ref[...].astype(o_ref.dtype)


def _rmsnorm_swiglu_residual_kernel(x_ref, g_ref, w1_ref, w3_ref, w2_ref,
                                    o_ref, acc_ref, h_ref, *, eps):
    # out = x + (silu(RMSNorm(x) @ W1) * (RMSNorm(x) @ W3)) @ W2
    # FFN hidden dim F is tiled on grid axis 1 (reduction into acc_ref);
    # x doubles as both the norm input and the residual.  The normed
    # activations are computed once per row tile (f == 0) into a bf16 VMEM
    # scratch and reused for every F tile.
    f = pl.program_id(1)

    @pl.when(f == 0)
    def _():
        x = x_ref[...].astype(jnp.float32)
        acc_ref[...] = x
        inv = jax.lax.rsqrt(jnp.mean(x * x, axis=-1, keepdims=True) + eps)
        h_ref[...] = (x * inv * g_ref[...].astype(jnp.float32)).astype(h_ref.dtype)

    h = h_ref[...]
    gate = jnp.dot(h, w1_ref[...], preferred_element_type=jnp.float32)
    up = jnp.dot(h, w3_ref[...], preferred_element_type=jnp.float32)
    act = (gate * jax.nn.sigmoid(gate) * up).astype(w2_ref.dtype)  # SiLU in f32
    acc_ref[...] += jnp.dot(act, w2_ref[...],
                            preferred_element_type=jnp.float32)

    @pl.when(f == pl.num_programs(1) - 1)
    def _():
        o_ref[...] = acc_ref[...].astype(o_ref.dtype)


def _flash_attn_kernel(q_ref, k_ref, v_ref, o_ref, m_sc, l_sc, acc_sc):
    # Flash-style causal attention for one (batch, kv-head, group, q-block)
    # over KV blocks (grid axis 4, "arbitrary"). q is pre-scaled & RoPE'd.
    qi = pl.program_id(3)
    ki = pl.program_id(4)
    tq = q_ref.shape[2]
    tk = k_ref.shape[2]

    @pl.when(ki == 0)
    def _():
        m_sc[...] = jnp.full(m_sc.shape, -1e30, jnp.float32)
        l_sc[...] = jnp.zeros(l_sc.shape, jnp.float32)
        acc_sc[...] = jnp.zeros(acc_sc.shape, jnp.float32)

    # Skip KV blocks that lie entirely above the causal diagonal.
    @pl.when(ki * tk <= qi * tq + (tq - 1))
    def _():
        q = q_ref[0, 0]                           # (TQ, hd) bf16 (pre-scaled)
        k = k_ref[0, 0]                           # (TK, hd) bf16
        # contract last dims directly - no materialized k.T
        s = jax.lax.dot_general(q, k, (((1,), (1,)), ((), ())),
                                preferred_element_type=jnp.float32)  # (TQ, TK)
        row = qi * tq + jax.lax.broadcasted_iota(jnp.int32, (tq, tk), 0)
        col = ki * tk + jax.lax.broadcasted_iota(jnp.int32, (tq, tk), 1)
        s = jnp.where(col <= row, s, -1e30)       # causal mask (VPU, free slot)

        m_prev = m_sc[...]
        m_new = jnp.maximum(m_prev, jnp.max(s, axis=-1, keepdims=True))
        alpha = jnp.exp(m_prev - m_new)
        p = jnp.exp(s - m_new)
        l_sc[...] = alpha * l_sc[...] + jnp.sum(p, axis=-1, keepdims=True)
        acc_sc[...] = alpha * acc_sc[...] + jnp.dot(
            p.astype(v_ref.dtype), v_ref[0, 0],
            preferred_element_type=jnp.float32)
        m_sc[...] = m_new

    @pl.when(ki == pl.num_programs(4) - 1)
    def _():
        o_ref[0, 0] = (acc_sc[...] *
                       pl.reciprocal(l_sc[...], approx=True)).astype(o_ref.dtype)


# ------------------------------ kernel wrappers -----------------------------

def rmsnorm_matmul(x, gamma, w, *, eps=_EPS, out_dtype=None):
    """out = RMSNorm(x) @ w ; x:[M,D], w:[D,N]. N tiled, norm fused."""
    M, D = x.shape
    N = w.shape[1]
    TM = _pick_sublane_tile(M)
    TN = _pick_lane_tile(N)
    out_dtype = out_dtype or x.dtype
    return pl.pallas_call(
        functools.partial(_rmsnorm_matmul_kernel, eps=eps),
        out_shape=jax.ShapeDtypeStruct((M, N), out_dtype),
        grid=(M // TM, N // TN),
        in_specs=[
            pl.BlockSpec((TM, D), lambda i, j: (i, 0)),
            pl.BlockSpec((1, D), lambda i, j: (0, 0)),
            pl.BlockSpec((D, TN), lambda i, j: (0, j)),
        ],
        out_specs=pl.BlockSpec((TM, TN), lambda i, j: (i, j)),
        compiler_params=_cparams(("parallel", "parallel")),
    )(x, gamma.reshape(1, D), w)


def rmsnorm_matmul_wT(x, gamma, w, *, eps=_EPS, out_dtype=jnp.float32):
    """out = RMSNorm(x) @ w.T ; w:[N,D] (tied embedding). Vocab (N) tiled,
    contraction on the D axis - no transposed copy of w is ever made."""
    M, D = x.shape
    N = w.shape[0]
    TM = _pick_sublane_tile(M)
    TN = _pick_lane_tile(N, 1024)
    return pl.pallas_call(
        functools.partial(_rmsnorm_matmul_t_kernel, eps=eps),
        out_shape=jax.ShapeDtypeStruct((M, N), out_dtype),
        grid=(M // TM, N // TN),
        in_specs=[
            pl.BlockSpec((TM, D), lambda i, j: (i, 0)),
            pl.BlockSpec((1, D), lambda i, j: (0, 0)),
            pl.BlockSpec((TN, D), lambda i, j: (j, 0)),
        ],
        out_specs=pl.BlockSpec((TM, TN), lambda i, j: (i, j)),
        compiler_params=_cparams(("parallel", "parallel")),
    )(x, gamma.reshape(1, D), w)


def matmul_residual(x, w, resid):
    """out = resid + x @ w ; K tiled with a VMEM f32 accumulator."""
    M, K = x.shape
    N = w.shape[1]
    TM = _pick_sublane_tile(M)
    TN = _pick_lane_tile(N)
    TK = _pick_lane_tile(K)
    return pl.pallas_call(
        _matmul_residual_kernel,
        out_shape=jax.ShapeDtypeStruct((M, N), resid.dtype),
        grid=(M // TM, N // TN, K // TK),
        in_specs=[
            pl.BlockSpec((TM, TK), lambda i, j, k: (i, k)),
            pl.BlockSpec((TK, TN), lambda i, j, k: (k, j)),
            pl.BlockSpec((TM, TN), lambda i, j, k: (i, j)),
        ],
        out_specs=pl.BlockSpec((TM, TN), lambda i, j, k: (i, j)),
        scratch_shapes=[pltpu.VMEM((TM, TN), jnp.float32)],
        compiler_params=_cparams(("parallel", "parallel", "arbitrary")),
    )(x, w, resid)


def rmsnorm_swiglu_residual(x, gamma, w1, w3, w2, *, eps=_EPS):
    """out = x + SwiGLU(RMSNorm(x)) ; FFN hidden dim tiled (reduction axis)."""
    M, D = x.shape
    F = w1.shape[1]
    TM = _pick_sublane_tile(M)
    TF = _pick_lane_tile(F)
    return pl.pallas_call(
        functools.partial(_rmsnorm_swiglu_residual_kernel, eps=eps),
        out_shape=jax.ShapeDtypeStruct((M, D), x.dtype),
        grid=(M // TM, F // TF),
        in_specs=[
            pl.BlockSpec((TM, D), lambda i, f: (i, 0)),
            pl.BlockSpec((1, D), lambda i, f: (0, 0)),
            pl.BlockSpec((D, TF), lambda i, f: (0, f)),
            pl.BlockSpec((D, TF), lambda i, f: (0, f)),
            pl.BlockSpec((TF, D), lambda i, f: (f, 0)),
        ],
        out_specs=pl.BlockSpec((TM, D), lambda i, f: (i, 0)),
        scratch_shapes=[pltpu.VMEM((TM, D), jnp.float32),   # f32 accumulator
                        pltpu.VMEM((TM, D), x.dtype)],      # cached normed acts
        compiler_params=_cparams(("parallel", "arbitrary")),
    )(x, gamma.reshape(1, D), w1, w3, w2)


def flash_attention(q, k, v):
    """Causal GQA flash attention. q:[B,H,S,hd] (pre-scaled, RoPE'd),
    k/v:[B,Hkv,S,hd] -> [B,H,S,hd]. Grid (B,Hkv,group,nQ,nKV)."""
    B, H, S, hd = q.shape
    Hkv = k.shape[1]
    assert H % Hkv == 0, "n_heads must be a multiple of n_kv_heads"
    group = H // Hkv
    TQ = _pick_sublane_tile(S, 256)
    TK = _pick_sublane_tile(S, 256)

    q_idx = lambda b, kh, g, qi, ki: (b, kh * group + g, qi, 0)
    kv_idx = lambda b, kh, g, qi, ki: (b, kh, ki, 0)

    return pl.pallas_call(
        _flash_attn_kernel,
        out_shape=jax.ShapeDtypeStruct((B, H, S, hd), q.dtype),
        grid=(B, Hkv, group, S // TQ, S // TK),
        in_specs=[
            pl.BlockSpec((1, 1, TQ, hd), q_idx),
            pl.BlockSpec((1, 1, TK, hd), kv_idx),
            pl.BlockSpec((1, 1, TK, hd), kv_idx),
        ],
        out_specs=pl.BlockSpec((1, 1, TQ, hd), q_idx),
        scratch_shapes=[
            pltpu.VMEM((TQ, 1), jnp.float32),     # running max
            pltpu.VMEM((TQ, 1), jnp.float32),     # running sum
            pltpu.VMEM((TQ, hd), jnp.float32),    # output accumulator
        ],
        compiler_params=_cparams(
            ("parallel", "parallel", "parallel", "parallel", "arbitrary")),
    )(q, k, v)


# --------------------------- model glue (plain JAX) -------------------------

def rope_tables(S, hd):
    """cos/sin tables [1, S, 1, hd] (rotate-half convention), computed once
    per forward and reused by every layer / projection."""
    pos = jnp.arange(S, dtype=jnp.float32)
    inv_freq = 1.0 / (10000.0 ** (jnp.arange(0, hd, 2, dtype=jnp.float32) / hd))
    freqs = pos[:, None] * inv_freq[None, :]                 # [S, hd/2]
    cos = jnp.concatenate([jnp.cos(freqs), jnp.cos(freqs)], -1)
    sin = jnp.concatenate([jnp.sin(freqs), jnp.sin(freqs)], -1)
    return cos[None, :, None, :], sin[None, :, None, :]


def apply_rope(x, cos, sin, scale=1.0):
    """RoPE (rotate-half) on [B, S, H, hd]; optionally folds the attention
    scale (elementwise, fused by XLA with the surrounding reshape/transpose).
    # TODO(synk): fuse RoPE + the [B,S,H,hd]<->[B,H,S,hd] transposes into the
    # attention kernel; needs sub-128-lane rotate/concat which is fragile at
    # tiny head_dim, so it stays as XLA glue here."""
    hd = x.shape[-1]
    xf = x.astype(jnp.float32)
    x1, x2 = xf[..., : hd // 2], xf[..., hd // 2:]
    rot = jnp.concatenate([-x2, x1], axis=-1)
    return ((xf * cos + rot * sin) * scale).astype(x.dtype)


def init_params(key, d_model, n_tokens, n_layers, n_heads, n_kv_heads, d_ff,
                dtype=jnp.bfloat16):
    assert d_model % n_heads == 0
    assert n_heads % n_kv_heads == 0
    hd = d_model // n_heads
    scale = 0.02
    keys = jax.random.split(key, 1 + 5 * n_layers)
    params = {
        "embed": (jax.random.normal(keys[0], (n_tokens, d_model), jnp.float32)
                  * scale).astype(dtype),
        "final_norm": jnp.ones((d_model,), dtype),
        "layers": [],
    }
    ki = 1

    def nrm(shape):
        nonlocal ki
        w = jax.random.normal(keys[ki], shape, jnp.float32) * scale
        ki += 1
        return w.astype(dtype)

    qkv_out = (n_heads + 2 * n_kv_heads) * hd
    for _ in range(n_layers):
        params["layers"].append({
            "attn_norm": jnp.ones((d_model,), dtype),
            "ffn_norm": jnp.ones((d_model,), dtype),
            "wqkv": nrm((d_model, qkv_out)),   # merged Wq|Wk|Wv, stored [in,out]
            "wo": nrm((n_heads * hd, d_model)),
            "w1": nrm((d_model, d_ff)),
            "w3": nrm((d_model, d_ff)),
            "w2": nrm((d_ff, d_model)),
        })
    return params


def llama_forward(tokens, params, n_heads, n_kv_heads):
    # tokens: [B, S] int32 -> logits [B, S, n_tokens] (f32)
    embed = params["embed"]                                  # [V, D] bf16
    n_tokens, d_model = embed.shape
    hd = d_model // n_heads
    B, S = tokens.shape
    M = B * S
    attn_scale = 1.0 / math.sqrt(hd)

    x = embed[tokens].reshape(M, d_model)                    # gather (glue), bf16
    cos, sin = rope_tables(S, hd)                            # hoisted out of loop

    q_end = n_heads * hd
    k_end = q_end + n_kv_heads * hd

    for layer in params["layers"]:
        # ---- attention sub-block: fused RMSNorm + merged QKV projection ----
        qkv = rmsnorm_matmul(x, layer["attn_norm"], layer["wqkv"])
        q = qkv[:, :q_end].reshape(B, S, n_heads, hd)
        k = qkv[:, q_end:k_end].reshape(B, S, n_kv_heads, hd)
        v = qkv[:, k_end:].reshape(B, S, n_kv_heads, hd)
        q = apply_rope(q, cos, sin, scale=attn_scale).transpose(0, 2, 1, 3)
        k = apply_rope(k, cos, sin).transpose(0, 2, 1, 3)     # [B,Hkv,S,hd]
        v = v.transpose(0, 2, 1, 3)
        o = flash_attention(q, k, v)                          # [B,H,S,hd] bf16
        o = o.transpose(0, 2, 1, 3).reshape(M, n_heads * hd)
        x = matmul_residual(o, layer["wo"], x)                # x + o @ Wo

        # ---- feedforward sub-block: fused RMSNorm + SwiGLU + residual ----
        x = rmsnorm_swiglu_residual(x, layer["ffn_norm"],
                                    layer["w1"], layer["w3"], layer["w2"])

    # final RMSNorm + tied output projection (contracts against embed [V, D]
    # directly; vocab axis tiled; embed.T never materialized).
    logits = rmsnorm_matmul_wT(x, params["final_norm"], embed,
                               out_dtype=jnp.float32)
    return logits.reshape(B, S, n_tokens)


# ----------------------------------- main -----------------------------------

if __name__ == "__main__":
    d_model, n_tokens, n_layers = 32, 64, 2
    n_heads, n_kv_heads, d_ff = 4, 2, 32
    batch, seq = 2, 8

    key = jax.random.PRNGKey(0)
    pkey, tkey = jax.random.split(key)
    params = init_params(pkey, d_model, n_tokens, n_layers,
                         n_heads, n_kv_heads, d_ff)
    tokens = jax.random.randint(tkey, (batch, seq), 0, n_tokens, jnp.int32)

    fwd = jax.jit(functools.partial(
        llama_forward, n_heads=n_heads, n_kv_heads=n_kv_heads))
    logits = fwd(tokens, params)
    jax.block_until_ready(logits)

    assert logits.shape == (batch, seq, n_tokens), logits.shape
    assert bool(jnp.all(jnp.isfinite(logits)))
    print("KERNEL_OK")
</pallas_src>

<mosaic_0001>
module attributes {stable_mosaic.version = 11 : i64} {
  func.func @_rmsnorm_matmul_kernel(%arg0: i32, %arg1: i32, %arg2: memref<16x32xbf16, #tpu.memory_space<vmem>>, %arg3: memref<1x32xbf16, #tpu.memory_space<vmem>>, %arg4: memref<32x64xbf16, #tpu.memory_space<vmem>>, %arg5: memref<16x64xbf16, #tpu.memory_space<vmem>>) attributes {dimension_semantics = [#tpu.dimension_semantics<parallel>, #tpu.dimension_semantics<parallel>], iteration_bounds = array<i64: 1, 1>, scalar_prefetch = 0 : i64, scratch_operands = 0 : i64, tpu.core_type = #tpu.core_type<tc>, window_params = [{transform_indices = @transform_0, window_bounds = array<i64: 16, 32>}, {pipeline_mode = #tpu.pipeline_mode<synchronous>, transform_indices = @transform_1, window_bounds = array<i64: 1, 32>}, {transform_indices = @transform_2, window_bounds = array<i64: 32, 64>}, {transform_indices = @transform_3, window_bounds = array<i64: 16, 64>}]} {
    %c0 = arith.constant 0 : index
    %c0_0 = arith.constant 0 : index
    %0 = vector.load %arg2[%c0, %c0_0] : memref<16x32xbf16, #tpu.memory_space<vmem>>, vector<16x32xbf16>
    %1 = arith.extf %0 : vector<16x32xbf16> to vector<16x32xf32>
    %2 = arith.mulf %1, %1 : vector<16x32xf32>
    %cst = arith.constant dense<0.000000e+00> : vector<16xf32>
    %3 = vector.multi_reduction <add>, %2, %cst [1] : vector<16x32xf32> to vector<16xf32>
    %4 = vector.shape_cast %3 : vector<16xf32> to vector<16x1xf32>
    %cst_1 = arith.constant 3.200000e+01 : f32
    %5 = vector.broadcast %cst_1 : f32 to vector<16x1xf32>
    %6 = arith.divf %4, %5 : vector<16x1xf32>
    %cst_2 = arith.constant 9.99999997E-7 : f32
    %7 = vector.broadcast %cst_2 : f32 to vector<16x1xf32>
    %8 = arith.addf %6, %7 : vector<16x1xf32>
    %9 = math.rsqrt %8 : vector<16x1xf32>
    %10 = vector.broadcast %9 : vector<16x1xf32> to vector<16x32xf32>
    %11 = arith.mulf %1, %10 : vector<16x32xf32>
    %c0_3 = arith.constant 0 : index
    %c0_4 = arith.constant 0 : index
    %12 = vector.load %arg3[%c0_3, %c0_4] : memref<1x32xbf16, #tpu.memory_space<vmem>>, vector<1x32xbf16>
    %13 = arith.extf %12 : vector<1x32xbf16> to vector<1x32xf32>
    %14 = vector.broadcast %13 : vector<1x32xf32> to vector<16x32xf32>
    %15 = arith.mulf %11, %14 : vector<16x32xf32>
    %16 = arith.truncf %15 : vector<16x32xf32> to vector<16x32xbf16>
    %c0_5 = arith.constant 0 : index
    %c0_6 = arith.constant 0 : index
    %17 = vector.load %arg4[%c0_5, %c0_6] : memref<32x64xbf16, #tpu.memory_space<vmem>>, vector<32x64xbf16>
    %cst_7 = arith.constant dense<0.000000e+00> : vector<16x64xf32>
    %18 = tpu.matmul %16, %17, %cst_7 {dimension_numbers = #tpu.dot_dimension_numbers<[1], [0], [0], [1], [0, 0, 1, 1], [], []>} : vector<16x32xbf16>, vector<32x64xbf16>, vector<16x64xf32> -> vector<16x64xf32>
    %19 = arith.truncf %18 : vector<16x64xf32> to vector<16x64xbf16>
    %c0_8 = arith.constant 0 : index
    %c0_9 = arith.constant 0 : index
    %20 = vector.load %arg5[%c0_8, %c0_9] : memref<16x64xbf16, #tpu.memory_space<vmem>>, vector<16x64xbf16>
    tpu.vector_store %arg5[%c0_8, %c0_9], %19 {strides = array<i32>} : memref<16x64xbf16, #tpu.memory_space<vmem>>, vector<16x64xbf16>,
    return
  }
  func.func @transform_0(%arg0: i32, %arg1: i32) -> (i32, i32) {
    %c0_i32 = arith.constant 0 : i32
    %c0_i32_0 = arith.constant 0 : i32
    return %arg0, %c0_i32 : i32, i32
  }
  func.func @transform_1(%arg0: i32, %arg1: i32) -> (i32, i32) {
    %c0_i32 = arith.constant 0 : i32
    %c0_i32_0 = arith.constant 0 : i32
    %c0_i32_1 = arith.constant 0 : i32
    return %c0_i32, %c0_i32_0 : i32, i32
  }
  func.func @transform_2(%arg0: i32, %arg1: i32) -> (i32, i32) {
    %c0_i32 = arith.constant 0 : i32
    %c0_i32_0 = arith.constant 0 : i32
    return %c0_i32, %arg1 : i32, i32
  }
  func.func @transform_3(%arg0: i32, %arg1: i32) -> (i32, i32) {
    %c0_i32 = arith.constant 0 : i32
    return %arg0, %arg1 : i32, i32
  }
}

module attributes {stable_mosaic.version = 11 : i64} {
  func.func @_flash_attn_kernel(%arg0: i32, %arg1: i32, %arg2: i32, %arg3: i32, %arg4: i32, %arg5: memref<1x1x8x8xbf16, #tpu.memory_space<vmem>>, %arg6: memref<1x1x8x8xbf16, #tpu.memory_space<vmem>>, %arg7: memref<1x1x8x8xbf16, #tpu.memory_space<vmem>>, %arg8: memref<1x1x8x8xbf16, #tpu.memory_space<vmem>>, %arg9: memref<8x1xf32, #tpu.memory_space<vmem>>, %arg10: memref<8x1xf32, #tpu.memory_space<vmem>>, %arg11: memref<8x8xf32, #tpu.memory_space<vmem>>) attributes {dimension_semantics = [#tpu.dimension_semantics<parallel>, #tpu.dimension_semantics<parallel>, #tpu.dimension_semantics<parallel>, #tpu.dimension_semantics<parallel>, #tpu.dimension_semantics<arbitrary>], iteration_bounds = array<i64: 2, 2, 2, 1, 1>, scalar_prefetch = 0 : i64, scratch_operands = 3 : i64, tpu.core_type = #tpu.core_type<tc>, window_params = [{transform_indices = @transform_0, window_bounds = array<i64: 1, 1, 8, 8>}, {transform_indices = @transform_1, window_bounds = array<i64: 1, 1, 8, 8>}, {transform_indices = @transform_2, window_bounds = array<i64: 1, 1, 8, 8>}, {transform_indices = @transform_3, window_bounds = array<i64: 1, 1, 8, 8>}]} {
    %c0_i32 = arith.constant 0 : i32
    %0 = arith.cmpi eq, %arg4, %c0_i32 : i32
    %1 = arith.extui %0 : i1 to i32
    %c0_i32_0 = arith.constant 0 : i32
    %2 = arith.cmpi ne, %1, %c0_i32_0 : i32
    scf.if %2 {
      %cst = arith.constant -1.000000e+30 : f32
      %12 = vector.broadcast %cst : f32 to vector<8x1xf32>
      %c0 = arith.constant 0 : index
      %c0_5 = arith.constant 0 : index
      %13 = vector.load %arg9[%c0, %c0_5] : memref<8x1xf32, #tpu.memory_space<vmem>>, vector<8x1xf32>
      tpu.vector_store %arg9[%c0, %c0_5], %12 {strides = array<i32>} : memref<8x1xf32, #tpu.memory_space<vmem>>, vector<8x1xf32>,
      %cst_6 = arith.constant 0.000000e+00 : f32
      %14 = vector.broadcast %cst_6 : f32 to vector<8x1xf32>
      %c0_7 = arith.constant 0 : index
      %c0_8 = arith.constant 0 : index
      %15 = vector.load %arg10[%c0_7, %c0_8] : memref<8x1xf32, #tpu.memory_space<vmem>>, vector<8x1xf32>
      tpu.vector_store %arg10[%c0_7, %c0_8], %14 {strides = array<i32>} : memref<8x1xf32, #tpu.memory_space<vmem>>, vector<8x1xf32>,
      %cst_9 = arith.constant 0.000000e+00 : f32
      %16 = vector.broadcast %cst_9 : f32 to vector<8x8xf32>
      %c0_10 = arith.constant 0 : index
      %c0_11 = arith.constant 0 : index
      %17 = vector.load %arg11[%c0_10, %c0_11] : memref<8x8xf32, #tpu.memory_space<vmem>>, vector<8x8xf32>
      tpu.vector_store %arg11[%c0_10, %c0_11], %16 {strides = array<i32>} : memref<8x8xf32, #tpu.memory_space<vmem>>, vector<8x8xf32>,
    } else {
    }
    %c8_i32 = arith.constant 8 : i32
    %3 = arith.muli %arg4, %c8_i32 : i32
    %c8_i32_1 = arith.constant 8 : i32
    %4 = arith.muli %arg3, %c8_i32_1 : i32
    %c7_i32 = arith.constant 7 : i32
    %5 = arith.addi %4, %c7_i32 : i32
    %6 = arith.cmpi sle, %3, %5 : i32
    %7 = arith.extui %6 : i1 to i32
    %c0_i32_2 = arith.constant 0 : i32
    %8 = arith.cmpi ne, %7, %c0_i32_2 : i32
    scf.if %8 {
      %c0 = arith.constant 0 : index
      %c0_5 = arith.constant 0 : index
      %c0_6 = arith.constant 0 : index
      %c0_7 = arith.constant 0 : index
      %12 = vector.load %arg5[%c0, %c0_5, %c0_6, %c0_7] : memref<1x1x8x8xbf16, #tpu.memory_space<vmem>>, vector<1x1x8x8xbf16>
      %13 = vector.shape_cast %12 : vector<1x1x8x8xbf16> to vector<8x8xbf16>
      %c0_8 = arith.constant 0 : index
      %c0_9 = arith.constant 0 : index
      %c0_10 = arith.constant 0 : index
      %c0_11 = arith.constant 0 : index
      %14 = vector.load %arg6[%c0_8, %c0_9, %c0_10, %c0_11] : memref<1x1x8x8xbf16, #tpu.memory_space<vmem>>, vector<1x1x8x8xbf16>
      %15 = vector.shape_cast %14 : vector<1x1x8x8xbf16> to vector<8x8xbf16>
      %cst = arith.constant dense<0.000000e+00> : vector<8x8xf32>
      %16 = tpu.matmul %13, %15, %cst {dimension_numbers = #tpu.dot_dimension_numbers<[1], [1], [0], [0], [0, 0, 1, 0], [], []>} : vector<8x8xbf16>, vector<8x8xbf16>, vector<8x8xf32> -> vector<8x8xf32>
      %c8_i32_12 = arith.constant 8 : i32
      %17 = arith.muli %arg3, %c8_i32_12 : i32
      %18 = tpu.iota {dimensions = array<i32: 0>} : vector<8x8xi32>
      %19 = vector.broadcast %17 : i32 to vector<8x8xi32>
      %20 = arith.addi %19, %18 : vector<8x8xi32>
      %c8_i32_13 = arith.constant 8 : i32
      %21 = arith.muli %arg4, %c8_i32_13 : i32
      %22 = tpu.iota {dimensions = array<i32: 1>} : vector<8x8xi32>
      %23 = vector.broadcast %21 : i32 to vector<8x8xi32>
      %24 = arith.addi %23, %22 : vector<8x8xi32>
      %25 = arith.cmpi sle, %24, %20 : vector<8x8xi32>
      %cst_14 = arith.constant -1.000000e+30 : f32
      %26 = vector.broadcast %cst_14 : f32 to vector<8x8xf32>
      %27 = arith.select %25, %16, %26 : vector<8x8xi1>, vector<8x8xf32>
      %c0_15 = arith.constant 0 : index
      %c0_16 = arith.constant 0 : index
      %28 = vector.load %arg9[%c0_15, %c0_16] : memref<8x1xf32, #tpu.memory_space<vmem>>, vector<8x1xf32>
      %cst_17 = arith.constant dense<0xFF800000> : vector<8xf32>
      %29 = vector.multi_reduction <maximumf>, %27, %cst_17 [1] : vector<8x8xf32> to vector<8xf32>
      %30 = vector.shape_cast %29 : vector<8xf32> to vector<8x1xf32>
      %31 = arith.maximumf %28, %30 : vector<8x1xf32>
      %32 = arith.subf %28, %31 : vector<8x1xf32>
      %33 = math.exp %32 : vector<8x1xf32>
      %34 = vector.broadcast %31 : vector<8x1xf32> to vector<8x8xf32>
      %35 = arith.subf %27, %34 : vector<8x8xf32>
      %36 = math.exp %35 : vector<8x8xf32>
      %c0_18 = arith.constant 0 : index
      %c0_19 = arith.constant 0 : index
      %37 = vector.load %arg10[%c0_18, %c0_19] : memref<8x1xf32, #tpu.memory_space<vmem>>, vector<8x1xf32>
      %38 = arith.mulf %33, %37 : vector<8x1xf32>
      %cst_20 = arith.constant dense<0.000000e+00> : vector<8xf32>
      %39 = vector.multi_reduction <add>, %36, %cst_20 [1] : vector<8x8xf32> to vector<8xf32>
      %40 = vector.shape_cast %39 : vector<8xf32> to vector<8x1xf32>
      %41 = arith.addf %38, %40 : vector<8x1xf32>
      %c0_21 = arith.constant 0 : index
      %c0_22 = arith.constant 0 : index
      %42 = vector.load %arg10[%c0_21, %c0_22] : memref<8x1xf32, #tpu.memory_space<vmem>>, vector<8x1xf32>
      tpu.vector_store %arg10[%c0_21, %c0_22], %41 {strides = array<i32>} : memref<8x1xf32, #tpu.memory_space<vmem>>, vector<8x1xf32>,
      %c0_23 = arith.constant 0 : index
      %c0_24 = arith.constant 0 : index
      %43 = vector.load %arg11[%c0_23, %c0_24] : memref<8x8xf32, #tpu.memory_space<vmem>>, vector<8x8xf32>
      %44 = vector.broadcast %33 : vector<8x1xf32> to vector<8x8xf32>
      %45 = arith.mulf %44, %43 : vector<8x8xf32>
      %46 = arith.truncf %36 : vector<8x8xf32> to vector<8x8xbf16>
      %c0_25 = arith.constant 0 : index
      %c0_26 = arith.constant 0 : index
      %c0_27 = arith.constant 0 : index
      %c0_28 = arith.constant 0 : index
      %47 = vector.load %arg7[%c0_25, %c0_26, %c0_27, %c0_28] : memref<1x1x8x8xbf16, #tpu.memory_space<vmem>>, vector<1x1x8x8xbf16>
      %48 = vector.shape_cast %47 : vector<1x1x8x8xbf16> to vector<8x8xbf16>
      %cst_29 = arith.constant dense<0.000000e+00> : vector<8x8xf32>
      %49 = tpu.matmul %46, %48, %cst_29 {dimension_numbers = #tpu.dot_dimension_numbers<[1], [0], [0], [1], [0, 0, 1, 1], [], []>} : vector<8x8xbf16>, vector<8x8xbf16>, vector<8x8xf32> -> vector<8x8xf32>
      %50 = arith.addf %45, %49 : vector<8x8xf32>
      %c0_30 = arith.constant 0 : index
      %c0_31 = arith.constant 0 : index
      %51 = vector.load %arg11[%c0_30, %c0_31] : memref<8x8xf32, #tpu.memory_space<vmem>>, vector<8x8xf32>
      tpu.vector_store %arg11[%c0_30, %c0_31], %50 {strides = array<i32>} : memref<8x8xf32, #tpu.memory_space<vmem>>, vector<8x8xf32>,
      %c0_32 = arith.constant 0 : index
      %c0_33 = arith.constant 0 : index
      %52 = vector.load %arg9[%c0_32, %c0_33] : memref<8x1xf32, #tpu.memory_space<vmem>>, vector<8x1xf32>
      tpu.vector_store %arg9[%c0_32, %c0_33], %31 {strides = array<i32>} : memref<8x1xf32, #tpu.memory_space<vmem>>, vector<8x1xf32>,
    } else {
    }
    %c0_i32_3 = arith.constant 0 : i32
    %9 = arith.cmpi eq, %arg4, %c0_i32_3 : i32
    %10 = arith.extui %9 : i1 to i32
    %c0_i32_4 = arith.constant 0 : i32
    %11 = arith.cmpi ne, %10, %c0_i32_4 : i32
    scf.if %11 {
      %c0 = arith.constant 0 : index
      %c0_5 = arith.constant 0 : index
      %12 = vector.load %arg11[%c0, %c0_5] : memref<8x8xf32, #tpu.memory_space<vmem>>, vector<8x8xf32>
      %c0_6 = arith.constant 0 : index
      %c0_7 = arith.constant 0 : index
      %13 = vector.load %arg10[%c0_6, %c0_7] : memref<8x1xf32, #tpu.memory_space<vmem>>, vector<8x1xf32>
      %14 = tpu.reciprocal %13 {approx = true} : vector<8x1xf32> -> vector<8x1xf32>
      %15 = vector.broadcast %14 : vector<8x1xf32> to vector<8x8xf32>
      %16 = arith.mulf %12, %15 : vector<8x8xf32>
      %17 = arith.truncf %16 : vector<8x8xf32> to vector<8x8xbf16>
      %c0_8 = arith.constant 0 : index
      %c0_9 = arith.constant 0 : index
      %c0_10 = arith.constant 0 : index
      %c0_11 = arith.constant 0 : index
      %18 = vector.load %arg8[%c0_8, %c0_9, %c0_10, %c0_11] : memref<1x1x8x8xbf16, #tpu.memory_space<vmem>>, vector<1x1x8x8xbf16>
      %19 = vector.shape_cast %18 : vector<1x1x8x8xbf16> to vector<8x8xbf16>
      %20 = vector.shape_cast %17 : vector<8x8xbf16> to vector<1x1x8x8xbf16>
      tpu.vector_store %arg8[%c0_8, %c0_9, %c0_10, %c0_11], %20 {strides = array<i32>} : memref<1x1x8x8xbf16, #tpu.memory_space<vmem>>, vector<1x1x8x8xbf16>,
    } else {
    }
    return
  }
  func.func @transform_0(%arg0: i32, %arg1: i32, %arg2: i32, %arg3: i32, %arg4: i32) -> (i32, i32, i32, i32) {
    %c2_i32 = arith.constant 2 : i32
    %0 = arith.muli %arg1, %c2_i32 : i32
    %1 = arith.addi %0, %arg2 : i32
    %c0_i32 = arith.constant 0 : i32
    %c0_i32_0 = arith.constant 0 : i32
    return %arg0, %1, %arg3, %c0_i32 : i32, i32, i32, i32
  }
  func.func @transform_1(%arg0: i32, %arg1: i32, %arg2: i32, %arg3: i32, %arg4: i32) -> (i32, i32, i32, i32) {
    %c0_i32 = arith.constant 0 : i32
    %c0_i32_0 = arith.constant 0 : i32
    return %arg0, %arg1, %arg4, %c0_i32 : i32, i32, i32, i32
  }
  func.func @transform_2(%arg0: i32, %arg1: i32, %arg2: i32, %arg3: i32, %arg4: i32) -> (i32, i32, i32, i32) {
    %c0_i32 = arith.constant 0 : i32
    %c0_i32_0 = arith.constant 0 : i32
    return %arg0, %arg1, %arg4, %c0_i32 : i32, i32, i32, i32
  }
  func.func @transform_3(%arg0: i32, %arg1: i32, %arg2: i32, %arg3: i32, %arg4: i32) -> (i32, i32, i32, i32) {
    %c2_i32 = arith.constant 2 : i32
    %0 = arith.muli %arg1, %c2_i32 : i32
    %1 = arith.addi %0, %arg2 : i32
    %c0_i32 = arith.constant 0 : i32
    %c0_i32_0 = arith.constant 0 : i32
    return %arg0, %1, %arg3, %c0_i32 : i32, i32, i32, i32
  }
}

module attributes {stable_mosaic.version = 11 : i64} {
  func.func @_matmul_residual_kernel(%arg0: i32, %arg1: i32, %arg2: i32, %arg3: memref<16x32xbf16, #tpu.memory_space<vmem>>, %arg4: memref<32x32xbf16, #tpu.memory_space<vmem>>, %arg5: memref<16x32xbf16, #tpu.memory_space<vmem>>, %arg6: memref<16x32xbf16, #tpu.memory_space<vmem>>, %arg7: memref<16x32xf32, #tpu.memory_space<vmem>>) attributes {dimension_semantics = [#tpu.dimension_semantics<parallel>, #tpu.dimension_semantics<parallel>, #tpu.dimension_semantics<arbitrary>], iteration_bounds = array<i64: 1, 1, 1>, scalar_prefetch = 0 : i64, scratch_operands = 1 : i64, tpu.core_type = #tpu.core_type<tc>, window_params = [{transform_indices = @transform_0, window_bounds = array<i64: 16, 32>}, {transform_indices = @transform_1, window_bounds = array<i64: 32, 32>}, {transform_indices = @transform_2, window_bounds = array<i64: 16, 32>}, {transform_indices = @transform_3, window_bounds = array<i64: 16, 32>}]} {
    %c0_i32 = arith.constant 0 : i32
    %0 = arith.cmpi eq, %arg2, %c0_i32 : i32
    %1 = arith.extui %0 : i1 to i32
    %c0_i32_0 = arith.constant 0 : i32
    %2 = arith.cmpi ne, %1, %c0_i32_0 : i32
    scf.if %2 {
      %c0_10 = arith.constant 0 : index
      %c0_11 = arith.constant 0 : index
      %12 = vector.load %arg5[%c0_10, %c0_11] : memref<16x32xbf16, #tpu.memory_space<vmem>>, vector<16x32xbf16>
      %13 = arith.extf %12 : vector<16x32xbf16> to vector<16x32xf32>
      %c0_12 = arith.constant 0 : index
      %c0_13 = arith.constant 0 : index
      %14 = vector.load %arg7[%c0_12, %c0_13] : memref<16x32xf32, #tpu.memory_space<vmem>>, vector<16x32xf32>
      tpu.vector_store %arg7[%c0_12, %c0_13], %13 {strides = array<i32>} : memref<16x32xf32, #tpu.memory_space<vmem>>, vector<16x32xf32>,
    } else {
    }
    %c0 = arith.constant 0 : index
    %c0_1 = arith.constant 0 : index
    %3 = vector.load %arg7[%c0, %c0_1] : memref<16x32xf32, #tpu.memory_space<vmem>>, vector<16x32xf32>
    %c0_2 = arith.constant 0 : index
    %c0_3 = arith.constant 0 : index
    %4 = vector.load %arg3[%c0_2, %c0_3] : memref<16x32xbf16, #tpu.memory_space<vmem>>, vector<16x32xbf16>
    %c0_4 = arith.constant 0 : index
    %c0_5 = arith.constant 0 : index
    %5 = vector.load %arg4[%c0_4, %c0_5] : memref<32x32xbf16, #tpu.memory_space<vmem>>, vector<32x32xbf16>
    %cst = arith.constant dense<0.000000e+00> : vector<16x32xf32>
    %6 = tpu.matmul %4, %5, %cst {dimension_numbers = #tpu.dot_dimension_numbers<[1], [0], [0], [1], [0, 0, 1, 1], [], []>} : vector<16x32xbf16>, vector<32x32xbf16>, vector<16x32xf32> -> vector<16x32xf32>
    %7 = arith.addf %3, %6 : vector<16x32xf32>
    %c0_6 = arith.constant 0 : index
    %c0_7 = arith.constant 0 : index
    %8 = vector.load %arg7[%c0_6, %c0_7] : memref<16x32xf32, #tpu.memory_space<vmem>>, vector<16x32xf32>
    tpu.vector_store %arg7[%c0_6, %c0_7], %7 {strides = array<i32>} : memref<16x32xf32, #tpu.memory_space<vmem>>, vector<16x32xf32>,
    %c0_i32_8 = arith.constant 0 : i32
    %9 = arith.cmpi eq, %arg2, %c0_i32_8 : i32
    %10 = arith.extui %9 : i1 to i32
    %c0_i32_9 = arith.constant 0 : i32
    %11 = arith.cmpi ne, %10, %c0_i32_9 : i32
    scf.if %11 {
      %c0_10 = arith.constant 0 : index
      %c0_11 = arith.constant 0 : index
      %12 = vector.load %arg7[%c0_10, %c0_11] : memref<16x32xf32, #tpu.memory_space<vmem>>, vector<16x32xf32>
      %13 = arith.truncf %12 : vector<16x32xf32> to vector<16x32xbf16>
      %c0_12 = arith.constant 0 : index
      %c0_13 = arith.constant 0 : index
      %14 = vector.load %arg6[%c0_12, %c0_13] : memref<16x32xbf16, #tpu.memory_space<vmem>>, vector<16x32xbf16>
      tpu.vector_store %arg6[%c0_12, %c0_13], %13 {strides = array<i32>} : memref<16x32xbf16, #tpu.memory_space<vmem>>, vector<16x32xbf16>,
    } else {
    }
    return
  }
  func.func @transform_0(%arg0: i32, %arg1: i32, %arg2: i32) -> (i32, i32) {
    %c0_i32 = arith.constant 0 : i32
    return %arg0, %arg2 : i32, i32
  }
  func.func @transform_1(%arg0: i32, %arg1: i32, %arg2: i32) -> (i32, i32) {
    %c0_i32 = arith.constant 0 : i32
    return %arg2, %arg1 : i32, i32
  }
  func.func @transform_2(%arg0: i32, %arg1: i32, %arg2: i32) -> (i32, i32) {
    %c0_i32 = arith.constant 0 : i32
    return %arg0, %arg1 : i32, i32
  }
  func.func @transform_3(%arg0: i32, %arg1: i32, %arg2: i32) -> (i32, i32) {
    %c0_i32 = arith.constant 0 : i32
    return %arg0, %arg1 : i32, i32
  }
}

module attributes {stable_mosaic.version = 11 : i64} {
  func.func @_rmsnorm_swiglu_residual_kernel(%arg0: i32, %arg1: i32, %arg2: memref<16x32xbf16, #tpu.memory_space<vmem>>, %arg3: memref<1x32xbf16, #tpu.memory_space<vmem>>, %arg4: memref<32x32xbf16, #tpu.memory_space<vmem>>, %arg5: memref<32x32xbf16, #tpu.memory_space<vmem>>, %arg6: memref<32x32xbf16, #tpu.memory_space<vmem>>, %arg7: memref<16x32xbf16, #tpu.memory_space<vmem>>, %arg8: memref<16x32xf32, #tpu.memory_space<vmem>>, %arg9: memref<16x32xbf16, #tpu.memory_space<vmem>>) attributes {dimension_semantics = [#tpu.dimension_semantics<parallel>, #tpu.dimension_semantics<arbitrary>], iteration_bounds = array<i64: 1, 1>, scalar_prefetch = 0 : i64, scratch_operands = 2 : i64, tpu.core_type = #tpu.core_type<tc>, window_params = [{transform_indices = @transform_0, window_bounds = array<i64: 16, 32>}, {pipeline_mode = #tpu.pipeline_mode<synchronous>, transform_indices = @transform_1, window_bounds = array<i64: 1, 32>}, {transform_indices = @transform_2, window_bounds = array<i64: 32, 32>}, {transform_indices = @transform_3, window_bounds = array<i64: 32, 32>}, {transform_indices = @transform_4, window_bounds = array<i64: 32, 32>}, {transform_indices = @transform_5, window_bounds = array<i64: 16, 32>}]} {
    %c0_i32 = arith.constant 0 : i32
    %0 = arith.cmpi eq, %arg1, %c0_i32 : i32
    %1 = arith.extui %0 : i1 to i32
    %c0_i32_0 = arith.constant 0 : i32
    %2 = arith.cmpi ne, %1, %c0_i32_0 : i32
    scf.if %2 {
      %c0_17 = arith.constant 0 : index
      %c0_18 = arith.constant 0 : index
      %24 = vector.load %arg2[%c0_17, %c0_18] : memref<16x32xbf16, #tpu.memory_space<vmem>>, vector<16x32xbf16>
      %25 = arith.extf %24 : vector<16x32xbf16> to vector<16x32xf32>
      %c0_19 = arith.constant 0 : index
      %c0_20 = arith.constant 0 : index
      %26 = vector.load %arg8[%c0_19, %c0_20] : memref<16x32xf32, #tpu.memory_space<vmem>>, vector<16x32xf32>
      tpu.vector_store %arg8[%c0_19, %c0_20], %25 {strides = array<i32>} : memref<16x32xf32, #tpu.memory_space<vmem>>, vector<16x32xf32>,
      %27 = arith.mulf %25, %25 : vector<16x32xf32>
      %cst_21 = arith.constant dense<0.000000e+00> : vector<16xf32>
      %28 = vector.multi_reduction <add>, %27, %cst_21 [1] : vector<16x32xf32> to vector<16xf32>
      %29 = vector.shape_cast %28 : vector<16xf32> to vector<16x1xf32>
      %cst_22 = arith.constant 3.200000e+01 : f32
      %30 = vector.broadcast %cst_22 : f32 to vector<16x1xf32>
      %31 = arith.divf %29, %30 : vector<16x1xf32>
      %cst_23 = arith.constant 9.99999997E-7 : f32
      %32 = vector.broadcast %cst_23 : f32 to vector<16x1xf32>
      %33 = arith.addf %31, %32 : vector<16x1xf32>
      %34 = math.rsqrt %33 : vector<16x1xf32>
      %35 = vector.broadcast %34 : vector<16x1xf32> to vector<16x32xf32>
      %36 = arith.mulf %25, %35 : vector<16x32xf32>
      %c0_24 = arith.constant 0 : index
      %c0_25 = arith.constant 0 : index
      %37 = vector.load %arg3[%c0_24, %c0_25] : memref<1x32xbf16, #tpu.memory_space<vmem>>, vector<1x32xbf16>
      %38 = arith.extf %37 : vector<1x32xbf16> to vector<1x32xf32>
      %39 = vector.broadcast %38 : vector<1x32xf32> to vector<16x32xf32>
      %40 = arith.mulf %36, %39 : vector<16x32xf32>
      %41 = arith.truncf %40 : vector<16x32xf32> to vector<16x32xbf16>
      %c0_26 = arith.constant 0 : index
      %c0_27 = arith.constant 0 : index
      %42 = vector.load %arg9[%c0_26, %c0_27] : memref<16x32xbf16, #tpu.memory_space<vmem>>, vector<16x32xbf16>
      tpu.vector_store %arg9[%c0_26, %c0_27], %41 {strides = array<i32>} : memref<16x32xbf16, #tpu.memory_space<vmem>>, vector<16x32xbf16>,
    } else {
    }
    %c0 = arith.constant 0 : index
    %c0_1 = arith.constant 0 : index
    %3 = vector.load %arg9[%c0, %c0_1] : memref<16x32xbf16, #tpu.memory_space<vmem>>, vector<16x32xbf16>
    %c0_2 = arith.constant 0 : index
    %c0_3 = arith.constant 0 : index
    %4 = vector.load %arg4[%c0_2, %c0_3] : memref<32x32xbf16, #tpu.memory_space<vmem>>, vector<32x32xbf16>
    %cst = arith.constant dense<0.000000e+00> : vector<16x32xf32>
    %5 = tpu.matmul %3, %4, %cst {dimension_numbers = #tpu.dot_dimension_numbers<[1], [0], [0], [1], [0, 0, 1, 1], [], []>} : vector<16x32xbf16>, vector<32x32xbf16>, vector<16x32xf32> -> vector<16x32xf32>
    %c0_4 = arith.constant 0 : index
    %c0_5 = arith.constant 0 : index
    %6 = vector.load %arg5[%c0_4, %c0_5] : memref<32x32xbf16, #tpu.memory_space<vmem>>, vector<32x32xbf16>
    %cst_6 = arith.constant dense<0.000000e+00> : vector<16x32xf32>
    %7 = tpu.matmul %3, %6, %cst_6 {dimension_numbers = #tpu.dot_dimension_numbers<[1], [0], [0], [1], [0, 0, 1, 1], [], []>} : vector<16x32xbf16>, vector<32x32xbf16>, vector<16x32xf32> -> vector<16x32xf32>
    %8 = arith.negf %5 : vector<16x32xf32>
    %9 = math.exp %8 : vector<16x32xf32>
    %cst_7 = arith.constant 1.000000e+00 : f32
    %10 = vector.broadcast %cst_7 : f32 to vector<16x32xf32>
    %11 = arith.addf %10, %9 : vector<16x32xf32>
    %12 = arith.divf %10, %11 : vector<16x32xf32>
    %13 = arith.mulf %5, %12 : vector<16x32xf32>
    %14 = arith.mulf %13, %7 : vector<16x32xf32>
    %15 = arith.truncf %14 : vector<16x32xf32> to vector<16x32xbf16>
    %c0_8 = arith.constant 0 : index
    %c0_9 = arith.constant 0 : index
    %16 = vector.load %arg8[%c0_8, %c0_9] : memref<16x32xf32, #tpu.memory_space<vmem>>, vector<16x32xf32>
    %c0_10 = arith.constant 0 : index
    %c0_11 = arith.constant 0 : index
    %17 = vector.load %arg6[%c0_10, %c0_11] : memref<32x32xbf16, #tpu.memory_space<vmem>>, vector<32x32xbf16>
    %cst_12 = arith.constant dense<0.000000e+00> : vector<16x32xf32>
    %18 = tpu.matmul %15, %17, %cst_12 {dimension_numbers = #tpu.dot_dimension_numbers<[1], [0], [0], [1], [0, 0, 1, 1], [], []>} : vector<16x32xbf16>, vector<32x32xbf16>, vector<16x32xf32> -> vector<16x32xf32>
    %19 = arith.addf %16, %18 : vector<16x32xf32>
    %c0_13 = arith.constant 0 : index
    %c0_14 = arith.constant 0 : index
    %20 = vector.load %arg8[%c0_13, %c0_14] : memref<16x32xf32, #tpu.memory_space<vmem>>, vector<16x32xf32>
    tpu.vector_store %arg8[%c0_13, %c0_14], %19 {strides = array<i32>} : memref<16x32xf32, #tpu.memory_space<vmem>>, vector<16x32xf32>,
    %c0_i32_15 = arith.constant 0 : i32
    %21 = arith.cmpi eq, %arg1, %c0_i32_15 : i32
    %22 = arith.extui %21 : i1 to i32
    %c0_i32_16 = arith.constant 0 : i32
    %23 = arith.cmpi ne, %22, %c0_i32_16 : i32
    scf.if %23 {
      %c0_17 = arith.constant 0 : index
      %c0_18 = arith.constant 0 : index
      %24 = vector.load %arg8[%c0_17, %c0_18] : memref<16x32xf32, #tpu.memory_space<vmem>>, vector<16x32xf32>
      %25 = arith.truncf %24 : vector<16x32xf32> to vector<16x32xbf16>
      %c0_19 = arith.constant 0 : index
      %c0_20 = arith.constant 0 : index
      %26 = vector.load %arg7[%c0_19, %c0_20] : memref<16x32xbf16, #tpu.memory_space<vmem>>, vector<16x32xbf16>
      tpu.vector_store %arg7[%c0_19, %c0_20], %25 {strides = array<i32>} : memref<16x32xbf16, #tpu.memory_space<vmem>>, vector<16x32xbf16>,
    } else {
    }
    return
  }
  func.func @transform_0(%arg0: i32, %arg1: i32) -> (i32, i32) {
    %c0_i32 = arith.constant 0 : i32
    %c0_i32_0 = arith.constant 0 : i32
    return %arg0, %c0_i32 : i32, i32
  }
  func.func @transform_1(%arg0: i32, %arg1: i32) -> (i32, i32) {
    %c0_i32 = arith.constant 0 : i32
    %c0_i32_0 = arith.constant 0 : i32
    %c0_i32_1 = arith.constant 0 : i32
    return %c0_i32, %c0_i32_0 : i32, i32
  }
  func.func @transform_2(%arg0: i32, %arg1: i32) -> (i32, i32) {
    %c0_i32 = arith.constant 0 : i32
    %c0_i32_0 = arith.constant 0 : i32
    return %c0_i32, %arg1 : i32, i32
  }
  func.func @transform_3(%arg0: i32, %arg1: i32) -> (i32, i32) {
    %c0_i32 = arith.constant 0 : i32
    %c0_i32_0 = arith.constant 0 : i32
    return %c0_i32, %arg1 : i32, i32
  }
  func.func @transform_4(%arg0: i32, %arg1: i32) -> (i32, i32) {
    %c0_i32 = arith.constant 0 : i32
    %c0_i32_0 = arith.constant 0 : i32
    return %arg1, %c0_i32 : i32, i32
  }
  func.func @transform_5(%arg0: i32, %arg1: i32) -> (i32, i32) {
    %c0_i32 = arith.constant 0 : i32
    %c0_i32_0 = arith.constant 0 : i32
    return %arg0, %c0_i32 : i32, i32
  }
}

module attributes {stable_mosaic.version = 11 : i64} {
  func.func @_rmsnorm_matmul_t_kernel(%arg0: i32, %arg1: i32, %arg2: memref<16x32xbf16, #tpu.memory_space<vmem>>, %arg3: memref<1x32xbf16, #tpu.memory_space<vmem>>, %arg4: memref<64x32xbf16, #tpu.memory_space<vmem>>, %arg5: memref<16x64xf32, #tpu.memory_space<vmem>>) attributes {dimension_semantics = [#tpu.dimension_semantics<parallel>, #tpu.dimension_semantics<parallel>], iteration_bounds = array<i64: 1, 1>, scalar_prefetch = 0 : i64, scratch_operands = 0 : i64, tpu.core_type = #tpu.core_type<tc>, window_params = [{transform_indices = @transform_0, window_bounds = array<i64: 16, 32>}, {pipeline_mode = #tpu.pipeline_mode<synchronous>, transform_indices = @transform_1, window_bounds = array<i64: 1, 32>}, {transform_indices = @transform_2, window_bounds = array<i64: 64, 32>}, {transform_indices = @transform_3, window_bounds = array<i64: 16, 64>}]} {
    %c0 = arith.constant 0 : index
    %c0_0 = arith.constant 0 : index
    %0 = vector.load %arg2[%c0, %c0_0] : memref<16x32xbf16, #tpu.memory_space<vmem>>, vector<16x32xbf16>
    %1 = arith.extf %0 : vector<16x32xbf16> to vector<16x32xf32>
    %2 = arith.mulf %1, %1 : vector<16x32xf32>
    %cst = arith.constant dense<0.000000e+00> : vector<16xf32>
    %3 = vector.multi_reduction <add>, %2, %cst [1] : vector<16x32xf32> to vector<16xf32>
    %4 = vector.shape_cast %3 : vector<16xf32> to vector<16x1xf32>
    %cst_1 = arith.constant 3.200000e+01 : f32
    %5 = vector.broadcast %cst_1 : f32 to vector<16x1xf32>
    %6 = arith.divf %4, %5 : vector<16x1xf32>
    %cst_2 = arith.constant 9.99999997E-7 : f32
    %7 = vector.broadcast %cst_2 : f32 to vector<16x1xf32>
    %8 = arith.addf %6, %7 : vector<16x1xf32>
    %9 = math.rsqrt %8 : vector<16x1xf32>
    %10 = vector.broadcast %9 : vector<16x1xf32> to vector<16x32xf32>
    %11 = arith.mulf %1, %10 : vector<16x32xf32>
    %c0_3 = arith.constant 0 : index
    %c0_4 = arith.constant 0 : index
    %12 = vector.load %arg3[%c0_3, %c0_4] : memref<1x32xbf16, #tpu.memory_space<vmem>>, vector<1x32xbf16>
    %13 = arith.extf %12 : vector<1x32xbf16> to vector<1x32xf32>
    %14 = vector.broadcast %13 : vector<1x32xf32> to vector<16x32xf32>
    %15 = arith.mulf %11, %14 : vector<16x32xf32>
    %16 = arith.truncf %15 : vector<16x32xf32> to vector<16x32xbf16>
    %c0_5 = arith.constant 0 : index
    %c0_6 = arith.constant 0 : index
    %17 = vector.load %arg4[%c0_5, %c0_6] : memref<64x32xbf16, #tpu.memory_space<vmem>>, vector<64x32xbf16>
    %cst_7 = arith.constant dense<0.000000e+00> : vector<16x64xf32>
    %18 = tpu.matmul %16, %17, %cst_7 {dimension_numbers = #tpu.dot_dimension_numbers<[1], [1], [0], [0], [0, 0, 1, 0], [], []>} : vector<16x32xbf16>, vector<64x32xbf16>, vector<16x64xf32> -> vector<16x64xf32>
    %c0_8 = arith.constant 0 : index
    %c0_9 = arith.constant 0 : index
    %19 = vector.load %arg5[%c0_8, %c0_9] : memref<16x64xf32, #tpu.memory_space<vmem>>, vector<16x64xf32>
    tpu.vector_store %arg5[%c0_8, %c0_9], %18 {strides = array<i32>} : memref<16x64xf32, #tpu.memory_space<vmem>>, vector<16x64xf32>,
    return
  }
  func.func @transform_0(%arg0: i32, %arg1: i32) -> (i32, i32) {
    %c0_i32 = arith.constant 0 : i32
    %c0_i32_0 = arith.constant 0 : i32
    return %arg0, %c0_i32 : i32, i32
  }
  func.func @transform_1(%arg0: i32, %arg1: i32) -> (i32, i32) {
    %c0_i32 = arith.constant 0 : i32
    %c0_i32_0 = arith.constant 0 : i32
    %c0_i32_1 = arith.constant 0 : i32
    return %c0_i32, %c0_i32_0 : i32, i32
  }
  func.func @transform_2(%arg0: i32, %arg1: i32) -> (i32, i32) {
    %c0_i32 = arith.constant 0 : i32
    %c0_i32_0 = arith.constant 0 : i32
    return %arg1, %c0_i32 : i32, i32
  }
  func.func @transform_3(%arg0: i32, %arg1: i32) -> (i32, i32) {
    %c0_i32 = arith.constant 0 : i32
    return %arg0, %arg1 : i32, i32
  }
}

</mosaic_0001>

<bundles_post_ra>
// kernel: llama_forward.10
= control target key start
LH: loop header
LB: loop body
LE: loop exit
PB: predicated region body
PF: predicated region fallthrough
CT: control target
= control target key end

     0   :  { %s800_s12 = smov 0   ;;  %s802_s13 = smov 0   ;;  %s900_s0 = inlined_call_operand.vmem [shape: bf16[2,4,8,8], index: 0, kind: input, shape index: {}]   ;;  %s901_s1 = inlined_call_operand.vmem [shape: bf16[2,2,8,8], index: 1, kind: input, shape index: {}]   ;;  %s902_s2 = inlined_call_operand.vmem [shape: bf16[2,2,8,8], index: 2, kind: input, shape index: {}]   ;;  %s903_s3 = inlined_call_operand.vmem [shape: bf16[2,4,8,8], index: 3, kind: output, shape index: {}]  }
   0x1   :  { %s804_s14 = smov 0   ;;  %s806_s15 = smov 0  }
   0x2   :  { %s808_s16 = smov 0   ;;  %s810_s17 = smov 0  }
   0x3   :  { %s812_s18 = smov 0  }
   0x4 LB: > { %s38_s19 = sadd.s32 1, %s763_s15  ;;  %s42_s20 = sadd.s32 1, %s767_s16  ;;  %s775_s18 = sphi %s812_s18, %s13_s18   ;;  %s771_s17 = sphi %s810_s17, %s909_s17   ;;  %s767_s16 = sphi %s808_s16, %s908_s16   ;;  %s763_s15 = sphi %s806_s15, %s907_s15   ;;  %s759_s14 = sphi %s804_s14, %s906_s14   ;;  %s755_s13 = sphi %s802_s13, %s905_s13   ;;  %s751_s12 = sphi %s800_s12, %s904_s12  }
   0x5   : > { %p40_p0 = scmp.ge.s32.totalorder %s38_s19, 2  ;;  %p638_p1 = scmp.ge.s32.totalorder %s775_s18, 1 }
   0x6   : > { %p236_p2 = scmp.lt.s32.totalorder %s775_s18, 9  ;;  %s46_s21 = sadd.s32 1, %s771_s17 }
   0x7   : > { %s911_s19 = smov (%p40_p0, %s38_s19), 0  ;;  %s913_s20 = smov (!%p40_p0, %s42_s20), %s767_s16 }
   0x8   : > { %p237_p3 = pnand %p638_p1, %p236_p2  ;;  %p44_p4 = scmp.ge.s32.totalorder %s913_s20, 2 }
   0x9   : > { %p300_p6 = scmp.lt.s32.totalorder (!%p237_p3), %s759_s14, 1  ;;  %p315_p7 = scmp.lt.s32.totalorder (!%p237_p3), %s755_s13, 1 }
   0xa   : > { %s915_s20 = smov (%p44_p4, %s913_s20), 0  ;;  %s917_s21 = smov (!%p44_p4, %s46_s21), %s771_s17 }
   0xb   : > { %p48_p5 = scmp.ge.s32.totalorder %s917_s21, 2  ;;  %240 = sbr.rel (%p237_p3) target bundleno = 632 (0x278), region = 32 }
   0xc   : > { %s639_s22 = sshll.u32 (!%p237_p3), %s755_s13, 1 }
   0xd   : > { %s919_s21 = smov (%p48_p5, %s917_s21), 0  ;;  %s299_s24 = sadd.s32 (!%p237_p3), %s751_s12, %s639_s22 }
   0xe   : > { %p302_p8 = scmp.lt.s32.totalorder (!%p237_p3), %s299_s24, 3 }
  0x10   : > { %s921_s14 = smov (!%p300_p6, %s759_s14), 1  ;;  %s923_s13 = smov (!%p315_p7, %s755_s13), 1  ;;  %vm358_vm0 = vcmask 64512   ;;  %vm355_vm1 = vcmask 7168   ;;  %v777_v3 = vmov -1e+30   ;;  %v389_v4 = vlaneseq }
  0x11   : > { %s642_s23 = sshll.u32 %s921_s14, 1  ;;  %s640_s30 = sshll.u32 %s921_s14, 2  ;;  %356 = vst.msk [vmem:[#allocation2] sm:$0xff] %vm355_vm1, %v777_v3  ;;  %v778_v11 = vmov 0   ;;  %v779_v12 = vmov 0.0   ;;  %vm435_vm3 = vcmask 1043456  }
  0x12   : > { %s842_s25 = sadd.s32 %s642_s23, %s923_s13  ;;  %s925_s24 = smov (!%p302_p8, %s299_s24), 3  ;;  %v390_v5 = vshrl.u32 %v389_v4, 7  ;;  %v394_v6 = vand.u32 127, %v389_v4  ;;  %712 = vset.pattern.permute.xlu0 %v778_v11  ;;  %713 = vset.pattern.permute.xlu1 %v778_v11  ;;  %357 = vst.msk [vmem:[#allocation3] sm:$0xff] %vm355_vm1, %v779_v12  ;;  %vm468_vm4 = vcmask 60416  }
  0x13   : > { %s643_s26 = sshll.u32 %s842_s25, 2  ;;  %s851_s4 = sadd.s32 %s640_s30, %s925_s24  ;;  %714 = vset.pattern.permute.xlu2 %v778_v11  ;;  %359 = vst.msk [vmem:[#allocation4] sm:$0xff] %vm358_vm0, %v779_v12 }
  0x14   : > { %s323_s29 = scalar_lea.vmem %s901_s1, %s643_s26  ;;  %s641_s5 = sshll.u32 %s851_s4, 2  ;;  %vm397_vm2 = vcmp.le.s32.totalorder %v394_v6, %v390_v5 }
  0x15   : > { %v368_v0 = vld [vmem:[%s323_s29] sm:$0xf]  ;;  %s310_s8 = scalar_lea.vmem %s900_s0, %s641_s5  ;;  %s334_s11 = scalar_lea.vmem %s902_s2, %s643_s26 }
  0x16   : > { %v374_v1 = vsel %vm358_vm0, %v368_v0, 0  ;;  %v367_v2 = vld [vmem:[%s310_s8] sm:$0xf]  ;;  %s347_s14 = scalar_lea.vmem %s903_s3, %s641_s5 }
  0x17   : > { %383 = vmatpush.bf16.xpose.msra.mxu0 %v374_v1  ;;  %v431_v17 = vld [vmem:[%s334_s11] sm:$0xf] }
  0x18   : > { %v399_v13 = vld [vmem:[#allocation2] sm:$0xff]  ;;  %v437_v18 = vsel %vm435_vm3, %v431_v17, 0 }
  0x19   : > { %446 = vmatpush.bf16.msra.mxu1 %v437_v18  ;;  %v415_v27 = vld [vmem:[#allocation3] sm:$0xff] }
  0x1a   : > { %v423_v35 = vld [vmem:[#allocation4] sm:$0xff] }
  0x1e   : > { %649 = vmatmul.msk.bf16.vlgmr.msra.gmra.mxu0 %vm358_vm0, %v367_v2 }
  0x9b   : > { %v385_v7 = vpop.f32.mrf.mxu0 }
  0x9c   : > { %v398_v8 = vsel %vm397_vm2, %v385_v7, -1e+30 }
  0x9d   : > { %v400_v9 = vsel %vm358_vm0, %v398_v8, -inf }
  0x9e   : > { %401 = vmax.xlane.f32.xlu0 %v400_v9 }
  0xa3   : > { %v387_v10 = vpop.f32.mrf.mxu0 }
 0x111   : > { %v402_v14 = vpop.xlane.xlu0 %401 }
 0x112   : > { %v403_v15 = vmax.f32 %v399_v13, %v402_v14 }
 0x114   : > { %v404_v16 = vsub.f32 %v399_v13, %v403_v15  ;;  %454 = vst.msk [vmem:[#allocation2] sm:$0xff] %vm355_vm1, %v403_v15  ;;  %409 = vperm.xlu0 %712, %v403_v15  }
 0x116   : > { %v405_v25 = vmul.f32 1.442695, %v404_v16 }
 0x186   : > { %v410_v19 = vpop.permute.xlu0 %409 }
 0x187   : > { %v412_v20 = vsub.f32 %v398_v8, %v410_v19 }
 0x189   : > { %v413_v21 = vmul.f32 1.442695, %v412_v20 }
 0x18b   : > { %715 = vpow2.f32 %v413_v21 }
 0x18c   : > { %717 = vpow2.f32 %v405_v25 }
 0x191   : > { %v716_v22 = vpop.eup %715 }
 0x192   : > { %v417_v23 = vsel %vm358_vm0, %v716_v22, 0.0  ;;  %v430_v24 = vpack.c.bf16 %v716_v22, %v716_v22  ;;  %v718_v26 = vpop.eup %717 }
 0x193   : > { %418 = vadd.xlane.f32.xlu1 %v417_v23  ;;  %v416_v28 = vmul.f32 %v718_v26, %v415_v27 }
 0x194   : > { %650 = vmatmul.msk.bf16.vlgmr.msra.gmra.mxu1 %vm358_vm0, %v430_v24 }
 0x1ac   : > { %426 = vperm.xlu1 %713, %v718_v26  }
 0x206   : > { %v419_v29 = vpop.xlane.xlu1 %418 }
 0x207   : > { %v420_v30 = vadd.f32 %v419_v29, %v416_v28 }
 0x209   : > { %422 = vst.msk [vmem:[#allocation3] sm:$0xff] %vm355_vm1, %v420_v30 }
 0x210   : > { %v459_v31 = vld [vmem:[#allocation3] sm:$0xff] }
 0x211   : > { %v448_v32 = vpop.f32.mrf.mxu1  ;;  %719 = vrcp.f32 %v459_v31 }
 0x217   : > { %v720_v33 = vpop.eup %719 }
 0x218   : > { %463 = vperm.xlu2 %714, %v720_v33  }
 0x219   : > { %v450_v34 = vpop.f32.mrf.mxu1 }
 0x21e   : > { %v427_v36 = vpop.permute.xlu1 %426 }
 0x21f   : > { %v429_v37 = vmul.f32 %v427_v36, %v423_v35 }
 0x221   : > { %v452_v38 = vadd.f32 %v448_v32, %v429_v37 }
 0x223   : > { %453 = vst.msk [vmem:[#allocation4] sm:$0xff] %vm358_vm0, %v452_v38 }
 0x22a   : > { %v458_v39 = vld [vmem:[#allocation4] sm:$0xff] }
 0x272   : > { %v464_v40 = vpop.permute.xlu2 %463 }
 0x273   : > { %v466_v41 = vmul.f32 %v464_v40, %v458_v39 }
 0x275   : > { %v467_v42 = vpack.c.bf16 %v466_v41, %v466_v41 }
 0x277   : > { %469 = vst.msk [vmem:[%s347_s14] sm:$0xf] %vm468_vm4, %v467_v42 }
 0x278 PF: > { %s13_s18 = sadd.s32 1, %s775_s18   ;;  %s904_s12 = smov %s763_s15 }
 0x279   : > { %p10_p9 = scmp.ge.s32.totalorder %s13_s18, 10   ;;  %s905_s13 = smov %s767_s16 }
 0x27a   : > { %s906_s14 = smov %s771_s17  ;;  %s907_s15 = smov %s911_s19 }
 0x27b   : > { %s908_s16 = smov %s915_s20  ;;  %s909_s17 = smov %s919_s21 }
 0x27c   :  { %12 = sbr.rel (!%p10_p9) target bundleno = 4 (0x4), region = 80 }

// kernel: llama_forward.11
= control target key start
LH: loop header
LB: loop body
LE: loop exit
PB: predicated region body
PF: predicated region fallthrough
CT: control target
= control target key end

     0   :  { %vm23_vm0 = vcmask 261120   ;;  %vm80_vm1 = vcmask 257024   ;;  %s150_s1 = inlined_call_operand.vmem [shape: bf16[32,32], index: 1, kind: input, shape index: {}]   ;;  %s151_s2 = inlined_call_operand.vmem [shape: bf16[16,32], index: 2, kind: input, shape index: {}]   ;;  %s152_s0 = inlined_call_operand.vmem [shape: bf16[16,32], index: 0, kind: input, shape index: {}]   ;;  %s153_s3 = inlined_call_operand.vmem [shape: bf16[16,32], index: 3, kind: output, shape index: {}]  }
   0x1   :  { %v102_v0 = vld [vmem:[%s150_s1 + $0x8] sm:$0xff]  ;;  %v104_v1 = vld [vmem:[%s151_s2] sm:$0xff]  }
   0x2   :  { %61 = vmatpush.bf16.msra.mxu0 %v102_v0  ;;  %v101_v2 = vld [vmem:[%s150_s1] sm:$0xff]  ;;  %v105_v3 = vunpack.c.l.bf16 %v104_v1  ;;  %v106_v5 = vunpack.c.h.bf16 %v104_v1 }
   0x3   :  { %v100_v4 = vld [vmem:[%s152_s0] sm:$0xff] }
   0x4   :  { %24 = vst.msk [vmem:[#allocation2] sm:$0xff] %vm23_vm0, %v105_v3 }
   0x5   :  { %25 = vst.msk [vmem:[#allocation2 + $0x8] sm:$0xff] %vm23_vm0, %v106_v5 }
   0x6   :  { %62 = vmatpush.bf16.msra.mxu0 %v101_v2 }
   0x9   :  { %99 = vmatmul.msk.bf16.vlgmr.msra.gmra.mxu0 %vm23_vm0, %v100_v4 }
   0xb   :  { %v26_v6 = vld [vmem:[#allocation2] sm:$0xff] }
   0xc   :  { %v27_v9 = vld [vmem:[#allocation2 + $0x8] sm:$0xff] }
  0x86   :  { %v64_v7 = vpop.f32.mrf.mxu0 }
  0x87   :  { %v69_v8 = vadd.f32 %v64_v7, %v26_v6 }
  0x89   :  { %71 = vst.msk [vmem:[#allocation2] sm:$0xff] %vm23_vm0, %v69_v8 }
  0x8e   :  { %v66_v10 = vpop.f32.mrf.mxu0 }
  0x8f   :  { %v70_v11 = vadd.f32 %v66_v10, %v27_v9 }
  0x90   :  { %v76_v12 = vld [vmem:[#allocation2] sm:$0xff] }
  0x91   :  { %v78_v13 = vpack.c.bf16 %v76_v12, %v76_v12  ;;  %72 = vst.msk [vmem:[#allocation2 + $0x8] sm:$0xff] %vm23_vm0, %v70_v11 }
  0x93   :  { %81 = vst.msk [vmem:[%s153_s3] sm:$0xf] %vm80_vm1, %v78_v13 }
  0x98   :  { %v77_v14 = vld [vmem:[#allocation2 + $0x8] sm:$0xff] }
  0x99   :  { %v79_v15 = vpack.c.bf16 %v77_v14, %v77_v14 }
  0x9b   :  { %82 = vst.msk [vmem:[%s153_s3 + $0x4] sm:$0xf] %vm80_vm1, %v79_v15 }

// kernel: llama_forward.9
= control target key start
LH: loop header
LB: loop body
LE: loop exit
PB: predicated region body
PF: predicated region fallthrough
CT: control target
= control target key end

     0   :  { %vm21_vm0 = vcmask 261120   ;;  %v131_v7 = vmov 32.0   ;;  %vm102_vm8 = vcmask 519168   ;;  %s173_s0 = inlined_call_operand.vmem [shape: bf16[16,32], index: 0, kind: input, shape index: {}]   ;;  %s174_s2 = inlined_call_operand.vmem [shape: bf16[32,64], index: 2, kind: input, shape index: {}]   ;;  %s175_s1 = inlined_call_operand.vmem [shape: bf16[1,32], index: 1, kind: input, shape index: {}]   ;;  %s176_s3 = inlined_call_operand.vmem [shape: bf16[16,64], index: 3, kind: output, shape index: {}]  }
   0x1   :  { %v121_v0 = vld [vmem:[%s173_s0] sm:$0xff]   ;;  %125 = vrcp.f32 %v131_v7  ;;  %v119_v13 = vld [vmem:[%s174_s2 + $0x8] sm:$0xff] }
   0x2   :  { %v122_v1 = vunpack.c.l.bf16 %v121_v0  ;;  %v123_v3 = vunpack.c.h.bf16 %v121_v0  ;;  %92 = vmatpush.bf16.msra.mxu0 %v119_v13  ;;  %v118_v15 = vld [vmem:[%s174_s2] sm:$0xff] }
   0x3   :  { %v61_v31 = vld [vmem:[%s175_s1] sm:$0x1] }
   0x4   :  { %v19_v2 = vmul.f32 %v122_v1, %v122_v1  ;;  %v20_v5 = vmul.f32 %v123_v3, %v123_v3  ;;  %v62_v33 = vunpack.c.l.bf16 %v61_v31 }
   0x6   :  { %v22_v4 = vsel %vm21_vm0, %v19_v2, 0.0  ;;  %v25_v6 = vsel %vm21_vm0, %v20_v5, 0.0  ;;  %93 = vmatpush.bf16.msra.mxu0 %v118_v15  ;;  %v63_v38 = vperm.slane %v62_v33, 0 }
   0x7   :  { %23 = vadd.xlane.f32.xlu0 %v22_v4  ;;  %v126_v8 = vpop.eup %125 }
   0x8   :  { %v29_v9 = vmul.f32 32.0, %v126_v8  ;;  %vm33_vm1 = vweird.f32 %v126_v8 }
   0xa   :  { %v30_v10 = vsub.f32 1.0, %v29_v9 }
   0xc   :  { %v31_v11 = vmul.f32 %v126_v8, %v30_v10 }
   0xe   :  { %v32_v12 = vadd.f32 %v126_v8, %v31_v11 }
   0xf   :  { %26 = vadd.xlane.f32.xlu0 %v25_v6 }
  0x10   :  { %v34_v14 = vsel %vm33_vm1, %v126_v8, %v32_v12 }
  0x7a   :  { %v24_v16 = vpop.xlane.xlu0 %23 }
  0x7b   :  { %v35_v17 = vmul.f32 %v34_v14, %v24_v16 }
  0x7d   :  { %v37_v18 = vadd.f32 1e-06, %v35_v17 }
  0x7f   :  { %127 = vrsqrt.f32 %v37_v18  ;;  %vm45_vm3 = vweird.f32 %v37_v18 }
  0x82   :  { %v27_v19 = vpop.xlane.xlu0 %26 }
  0x83   :  { %v36_v20 = vmul.f32 %v34_v14, %v27_v19 }
  0x85   :  { %v128_v21 = vpop.eup %127  ;;  %v38_v22 = vadd.f32 1e-06, %v36_v20 }
  0x86   :  { %v40_v23 = vmul.f32 %v128_v21, %v37_v18  ;;  %vm46_vm2 = vweird.f32 %v128_v21 }
  0x87   :  { %129 = vrsqrt.f32 %v38_v22  ;;  %vm47_vm4 = vmor %vm45_vm3, %vm46_vm2  ;;  %vm55_vm6 = vweird.f32 %v38_v22 }
  0x88   :  { %v41_v24 = vmul.f32 %v128_v21, %v40_v23 }
  0x8a   :  { %v42_v25 = vmul.f32 0.5, %v41_v24 }
  0x8c   :  { %v43_v26 = vsub.f32 1.5, %v42_v25 }
  0x8d   :  { %v130_v27 = vpop.eup %129 }
  0x8e   :  { %v50_v28 = vmul.f32 %v130_v27, %v38_v22  ;;  %v44_v29 = vmul.f32 %v128_v21, %v43_v26  ;;  %vm56_vm5 = vweird.f32 %v130_v27 }
  0x8f   :  { %vm57_vm7 = vmor %vm55_vm6, %vm56_vm5 }
  0x90   :  { %v51_v30 = vmul.f32 %v130_v27, %v50_v28  ;;  %v48_v34 = vsel %vm47_vm4, %v128_v21, %v44_v29 }
  0x91   :  { %v59_v37 = vmul.f32 %v122_v1, %v48_v34 }
  0x92   :  { %v52_v32 = vmul.f32 0.5, %v51_v30 }
  0x93   :  { %v64_v41 = vmul.f32 %v63_v38, %v59_v37 }
  0x94   :  { %v53_v35 = vsub.f32 1.5, %v52_v32 }
  0x96   :  { %v54_v36 = vmul.f32 %v130_v27, %v53_v35 }
  0x98   :  { %v58_v39 = vsel %vm57_vm7, %v130_v27, %v54_v36 }
  0x99   :  { %v60_v40 = vmul.f32 %v123_v3, %v58_v39 }
  0x9b   :  { %v65_v42 = vmul.f32 %v63_v38, %v60_v40 }
  0x9d   :  { %v66_v43 = vpack.c.bf16 %v65_v42, %v64_v41 }
  0x9f   :  { %117 = vmatmul.msk.bf16.vlgmr.msra.gmra.mxu0 %vm21_vm0, %v66_v43 }
 0x11c   :  { %v95_v44 = vpop.f32.mrf.mxu0 }
 0x11d   :  { %v100_v45 = vpack.c.bf16 %v95_v44, %v95_v44 }
 0x11f   :  { %103 = vst.msk [vmem:[%s176_s3] sm:$0xf] %vm102_vm8, %v100_v45 }
 0x124   :  { %v97_v46 = vpop.f32.mrf.mxu0 }
 0x125   :  { %v101_v47 = vpack.c.bf16 %v97_v46, %v97_v46 }
 0x127   :  { %104 = vst.msk [vmem:[%s176_s3 + $0x4] sm:$0xf] %vm102_vm8, %v101_v47 }

// kernel: llama_forward.12
= control target key start
LH: loop header
LB: loop body
LE: loop exit
PB: predicated region body
PF: predicated region fallthrough
CT: control target
= control target key end

     0   :  { %vm29_vm0 = vcmask 261120   ;;  %v309_v7 = vmov 32.0   ;;  %vm80_vm5 = vcmask 257024   ;;  %s389_s0 = inlined_call_operand.vmem [shape: bf16[16,32], index: 0, kind: input, shape index: {}]   ;;  %s390_s2 = inlined_call_operand.vmem [shape: bf16[32,32], index: 2, kind: input, shape index: {}]   ;;  %s391_s3 = inlined_call_operand.vmem [shape: bf16[32,32], index: 3, kind: input, shape index: {}]   ;;  %s392_s1 = inlined_call_operand.vmem [shape: bf16[1,32], index: 1, kind: input, shape index: {}]   ;;  %s393_s4 = inlined_call_operand.vmem [shape: bf16[32,32], index: 4, kind: input, shape index: {}]   ;;  %s394_s5 = inlined_call_operand.vmem [shape: bf16[16,32], index: 5, kind: output, shape index: {}]  }
   0x1   :  { %v291_v0 = vld [vmem:[%s389_s0] sm:$0xff]   ;;  %295 = vrcp.f32 %v309_v7  ;;  %v285_v17 = vld [vmem:[%s390_s2 + $0x8] sm:$0xff] }
   0x2   :  { %v292_v1 = vunpack.c.l.bf16 %v291_v0  ;;  %v343_v2 = vunpack.c.h.bf16 %v291_v0  ;;  %v287_v18 = vld [vmem:[%s391_s3 + $0x8] sm:$0xff]  ;;  %116 = vmatpush.bf16.msra.mxu0 %v285_v17  ;;  %v284_v19 = vld [vmem:[%s390_s2] sm:$0xff] }
   0x3   :  { %146 = vmatpush.bf16.msra.mxu1 %v287_v18  ;;  %v286_v20 = vld [vmem:[%s391_s3] sm:$0xff]  ;;  %v289_v50 = vld [vmem:[%s393_s4 + $0x8] sm:$0xff] }
   0x4   :  { %v32_v3 = vmul.f32 %v292_v1, %v292_v1  ;;  %30 = vst.msk [vmem:[#allocation2] sm:$0xff] %vm29_vm0, %v292_v1  ;;  %v33_v5 = vmul.f32 %v343_v2, %v343_v2  ;;  %v73_v26 = vld [vmem:[%s392_s1] sm:$0x1]  ;;  %224 = vmatpush.bf16.msra.mxu2 %v289_v50 }
   0x5   :  { %31 = vst.msk [vmem:[#allocation2 + $0x8] sm:$0xff] %vm29_vm0, %v343_v2  ;;  %v74_v29 = vunpack.c.l.bf16 %v73_v26  ;;  %v288_v51 = vld [vmem:[%s393_s4] sm:$0xff] }
   0x6   :  { %v34_v4 = vsel %vm29_vm0, %v32_v3, 0.0  ;;  %v37_v6 = vsel %vm29_vm0, %v33_v5, 0.0  ;;  %117 = vmatpush.bf16.msra.mxu0 %v284_v19 }
   0x7   :  { %35 = vadd.xlane.f32.xlu0 %v34_v4  ;;  %v296_v8 = vpop.eup %295  ;;  %147 = vmatpush.bf16.msra.mxu1 %v286_v20  ;;  %v75_v34 = vperm.slane %v74_v29, 0 }
   0x8   :  { %v41_v9 = vmul.f32 32.0, %v296_v8  ;;  %vm45_vm1 = vweird.f32 %v296_v8  ;;  %225 = vmatpush.bf16.msra.mxu2 %v288_v51 }
   0xa   :  { %v42_v10 = vsub.f32 1.0, %v41_v9 }
   0xc   :  { %v43_v11 = vmul.f32 %v296_v8, %v42_v10 }
   0xe   :  { %v44_v12 = vadd.f32 %v296_v8, %v43_v11 }
   0xf   :  { %38 = vadd.xlane.f32.xlu0 %v37_v6 }
  0x10   :  { %v46_v13 = vsel %vm45_vm1, %v296_v8, %v44_v12 }
  0x7a   :  { %v36_v14 = vpop.xlane.xlu0 %35 }
  0x7b   :  { %v47_v15 = vmul.f32 %v46_v13, %v36_v14 }
  0x7d   :  { %v49_v16 = vadd.f32 1e-06, %v47_v15 }
  0x7f   :  { %297 = vrsqrt.f32 %v49_v16  ;;  %vm57_vm3 = vweird.f32 %v49_v16 }
  0x82   :  { %v39_v21 = vpop.xlane.xlu0 %38 }
  0x83   :  { %v48_v22 = vmul.f32 %v46_v13, %v39_v21  ;;  %v197_v21 = vld [vmem:[#allocation2] sm:$0xff] }
  0x85   :  { %v298_v23 = vpop.eup %297  ;;  %v50_v24 = vadd.f32 1e-06, %v48_v22 }
  0x86   :  { %v52_v25 = vmul.f32 %v298_v23, %v49_v16  ;;  %vm58_vm2 = vweird.f32 %v298_v23 }
  0x87   :  { %299 = vrsqrt.f32 %v50_v24  ;;  %vm59_vm4 = vmor %vm57_vm3, %vm58_vm2  ;;  %vm67_vm7 = vweird.f32 %v50_v24 }
  0x88   :  { %v53_v27 = vmul.f32 %v298_v23, %v52_v25 }
  0x8a   :  { %v54_v28 = vmul.f32 0.5, %v53_v27 }
  0x8c   :  { %v55_v30 = vsub.f32 1.5, %v54_v28 }
  0x8d   :  { %v300_v31 = vpop.eup %299 }
  0x8e   :  { %v56_v32 = vmul.f32 %v298_v23, %v55_v30  ;;  %v62_v33 = vmul.f32 %v300_v31, %v50_v24  ;;  %vm68_vm6 = vweird.f32 %v300_v31  ;;  %v198_v24 = vld [vmem:[#allocation2 + $0x8] sm:$0xff] }
  0x8f   :  { %vm69_vm8 = vmor %vm67_vm7, %vm68_vm6 }
  0x90   :  { %v60_v35 = vsel %vm59_vm4, %v298_v23, %v56_v32  ;;  %v63_v36 = vmul.f32 %v300_v31, %v62_v33 }
  0x91   :  { %v71_v37 = vmul.f32 %v292_v1, %v60_v35 }
  0x92   :  { %v64_v38 = vmul.f32 0.5, %v63_v36 }
  0x93   :  { %v76_v39 = vmul.f32 %v75_v34, %v71_v37 }
  0x94   :  { %v65_v40 = vsub.f32 1.5, %v64_v38 }
  0x95   :  { %v78_v41 = vpack.c.bf16 %v76_v39, %v76_v39 }
  0x96   :  { %v66_v42 = vmul.f32 %v300_v31, %v65_v40 }
  0x97   :  { %81 = vst.msk [vmem:[#allocation3] sm:$0xf] %vm80_vm5, %v78_v41 }
  0x98   :  { %v70_v43 = vsel %vm69_vm8, %v300_v31, %v66_v42 }
  0x99   :  { %v72_v44 = vmul.f32 %v343_v2, %v70_v43 }
  0x9b   :  { %v77_v45 = vmul.f32 %v75_v34, %v72_v44 }
  0x9d   :  { %v79_v46 = vpack.c.bf16 %v77_v45, %v77_v45 }
  0x9f   :  { %82 = vst.msk [vmem:[#allocation3 + $0x4] sm:$0xf] %vm80_vm5, %v79_v46 }
  0xa6   :  { %v283_v47 = vld [vmem:[#allocation3] sm:$0xff] }
  0xa7   :  { %262 = vmatmul.msk.bf16.vlgmr.msra.gmra.mxu0 %vm29_vm0, %v283_v47  ;;  %271 = vmatmul.msk.bf16.vlgmr.msra.gmra.mxu1 %vm29_vm0, %v283_v47 }
 0x124   :  { %v119_v48 = vpop.f32.mrf.mxu0  ;;  %v149_v3 = vpop.f32.mrf.mxu1 }
 0x125   :  { %v272_v49 = vmul.f32 -1.442695, %v119_v48 }
 0x127   :  { %301 = vpow2.f32 %v272_v49 }
 0x12c   :  { %v121_v52 = vpop.f32.mrf.mxu0  ;;  %v151_v17 = vpop.f32.mrf.mxu1 }
 0x12d   :  { %v302_v53 = vpop.eup %301  ;;  %v273_v54 = vmul.f32 -1.442695, %v121_v52 }
 0x12e   :  { %v160_v55 = vadd.f32 1.0, %v302_v53 }
 0x12f   :  { %303 = vpow2.f32 %v273_v54 }
 0x130   :  { %305 = vrcp.f32 %v160_v55  ;;  %v173_v0 = vand.u32 2147483648, %v160_v55  ;;  %vm167_vm10 = vweird.f32 %v160_v55  ;;  %v171_v1 = vand.u32 2147483647, %v160_v55 }
 0x132   :  { %v174_v6 = vor.u32 1.1754944e-38, %v173_v0  ;;  %vm172_vm12 = vcmp.eq.f32.partialorder %v171_v1, 8.507059e+37 }
 0x135   :  { %v304_v56 = vpop.eup %303 }
 0x136   :  { %v306_v57 = vpop.eup %305  ;;  %v161_v58 = vadd.f32 1.0, %v304_v56 }
 0x137   :  { %v163_v59 = vmul.f32 %v306_v57, %v160_v55  ;;  %vm168_vm9 = vweird.f32 %v306_v57 }
 0x138   :  { %307 = vrcp.f32 %v161_v58  ;;  %vm169_vm11 = vmor %vm167_vm10, %vm168_vm9  ;;  %v188_v7 = vand.u32 2147483648, %v161_v58  ;;  %v186_v9 = vand.u32 2147483647, %v161_v58  ;;  %vm182_vm14 = vweird.f32 %v161_v58 }
 0x139   :  { %v164_v60 = vsub.f32 1.0, %v163_v59 }
 0x13a   :  { %v189_v12 = vor.u32 1.1754944e-38, %v188_v7  ;;  %vm187_vm1 = vcmp.eq.f32.partialorder %v186_v9, 8.507059e+37 }
 0x13b   :  { %v165_v61 = vmul.f32 %v306_v57, %v164_v60 }
 0x13d   :  { %v166_v62 = vadd.f32 %v306_v57, %v165_v61 }
 0x13e   :  { %v308_v63 = vpop.eup %307 }
 0x13f   :  { %v178_v2 = vmul.f32 %v308_v63, %v161_v58  ;;  %v170_v4 = vsel %vm169_vm11, %v306_v57, %v166_v62  ;;  %vm183_vm13 = vweird.f32 %v308_v63 }
 0x140   :  { %v175_v10 = vsel %vm172_vm12, %v174_v6, %v170_v4  ;;  %vm184_vm15 = vmor %vm182_vm14, %vm183_vm13 }
 0x141   :  { %v179_v5 = vsub.f32 1.0, %v178_v2  ;;  %v192_v13 = vmul.f32 %v175_v10, %v119_v48 }
 0x143   :  { %v180_v8 = vmul.f32 %v308_v63, %v179_v5  ;;  %v194_v18 = vmul.f32 %v192_v13, %v149_v3 }
 0x145   :  { %v181_v11 = vadd.f32 %v308_v63, %v180_v8 }
 0x147   :  { %v185_v14 = vsel %vm184_vm15, %v308_v63, %v181_v11 }
 0x148   :  { %v190_v15 = vsel %vm187_vm1, %v189_v12, %v185_v14 }
 0x149   :  { %v193_v16 = vmul.f32 %v190_v15, %v121_v52 }
 0x14b   :  { %v195_v19 = vmul.f32 %v193_v16, %v151_v17 }
 0x14d   :  { %v196_v20 = vpack.c.bf16 %v195_v19, %v194_v18 }
 0x14f   :  { %282 = vmatmul.msk.bf16.vlgmr.msra.gmra.mxu2 %vm29_vm0, %v196_v20 }
 0x1d2   :  { %v227_v22 = vpop.f32.mrf.mxu2 }
 0x1d3   :  { %v232_v23 = vadd.f32 %v227_v22, %v197_v21 }
 0x1d5   :  { %234 = vst.msk [vmem:[#allocation2] sm:$0xff] %vm29_vm0, %v232_v23 }
 0x1da   :  { %v229_v25 = vpop.f32.mrf.mxu2 }
 0x1db   :  { %v233_v26 = vadd.f32 %v229_v25, %v198_v24 }
 0x1dc   :  { %v239_v27 = vld [vmem:[#allocation2] sm:$0xff] }
 0x1dd   :  { %v241_v28 = vpack.c.bf16 %v239_v27, %v239_v27  ;;  %235 = vst.msk [vmem:[#allocation2 + $0x8] sm:$0xff] %vm29_vm0, %v233_v26 }
 0x1df   :  { %244 = vst.msk [vmem:[%s394_s5] sm:$0xf] %vm80_vm5, %v241_v28 }
 0x1e4   :  { %v240_v29 = vld [vmem:[#allocation2 + $0x8] sm:$0xff] }
 0x1e5   :  { %v242_v30 = vpack.c.bf16 %v240_v29, %v240_v29 }
 0x1e7   :  { %245 = vst.msk [vmem:[%s394_s5 + $0x4] sm:$0xf] %vm80_vm5, %v242_v30 }

// kernel: llama_forward.17
= control target key start
LH: loop header
LB: loop body
LE: loop exit
PB: predicated region body
PF: predicated region fallthrough
CT: control target
= control target key end

     0   :  { %s259_s0 = inlined_call_operand.vmem [shape: bf16[16,32], index: 0, kind: input, shape index: {}]   ;;  %s260_s1 = inlined_call_operand.vmem [shape: bf16[1,32], index: 1, kind: input, shape index: {}]   ;;  %s261_s2 = inlined_call_operand.vmem [shape: bf16[64,32], index: 2, kind: input, shape index: {}]   ;;  %s262_s3 = inlined_call_operand.hbm [shape: f32[16,64], index: 3, kind: output, shape index: {}]  }
   0x1   :  { %v168_v0 = vld [vmem:[%s259_s0] sm:$0xff]  }
   0x2   :  { %8 = vsyncpa [#allocation3], 0  ;;  %v169_v1 = vunpack.c.l.bf16 %v168_v0  ;;  %vm22_vm0 = vcmask 261120   ;;  %v170_v3 = vunpack.c.h.bf16 %v168_v0  ;;  %v166_v7 = vld [vmem:[%s261_s2 + $0x18] sm:$0xff]  ;;  %v207_v8 = vmov 32.0   ;;  %v165_v11 = vld [vmem:[%s261_s2 + $0x10] sm:$0xff] }
   0x3   :  { %175 = vrcp.f32 %v207_v8  ;;  %v109_v9 = vsel %vm22_vm0, %v166_v7, 0  ;;  %v106_v12 = vsel %vm22_vm0, %v165_v11, 0  ;;  %v164_v15 = vld [vmem:[%s261_s2 + $0x8] sm:$0xff]  ;;  %v163_v19 = vld [vmem:[%s261_s2] sm:$0xff]  ;;  %vm125_vm8 = vcmask 523264   ;;  %s134_s25 = sshll.u32 %s262_s3, 4  ;;  %s135_s25 = int_to_ptr.hbm [resolvable:$true] %s134_s25 }
   0x4   :  { %v20_v2 = vmul.f32 %v169_v1, %v169_v1  ;;  %v21_v5 = vmul.f32 %v170_v3, %v170_v3  ;;  %115 = vmatpush.bf16.xpose.msra.mxu0 %v109_v9  ;;  %v103_v16 = vsel %vm22_vm0, %v164_v15, 0  ;;  %v100_v20 = vsel %vm22_vm0, %v163_v19, 0  ;;  %v62_v37 = vld [vmem:[%s260_s1] sm:$0x1]  ;;  %s208_s1 = smov [#allocation2]   ;;  %s209_s26 = smov 128  }
   0x5   :  { %v63_v39 = vunpack.c.l.bf16 %v62_v37  ;;  %s132_s22 = sshll.u32 %s208_s1, 4  ;;  %s210_s27 = smov 8   ;;  %s133_s22 = int_to_ptr.vmem [resolvable:$true] %s132_s22 }
   0x6   :  { %v23_v4 = vsel %vm22_vm0, %v20_v2, 0.0  ;;  %v26_v6 = vsel %vm22_vm0, %v21_v5, 0.0 }
   0x7   :  { %24 = vadd.xlane.f32.xlu0 %v23_v4  ;;  %v64_v44 = vperm.slane %v63_v39, 0 }
   0x9   :  { %v176_v10 = vpop.eup %175 }
   0xa   :  { %v30_v13 = vmul.f32 32.0, %v176_v10  ;;  %vm34_vm1 = vweird.f32 %v176_v10 }
   0xc   :  { %116 = vmatpush.bf16.xpose.msra.mxu0 %v106_v12  ;;  %v31_v14 = vsub.f32 1.0, %v30_v13 }
   0xe   :  { %v32_v17 = vmul.f32 %v176_v10, %v31_v14 }
   0xf   :  { %27 = vadd.xlane.f32.xlu0 %v26_v6 }
  0x10   :  { %v33_v18 = vadd.f32 %v176_v10, %v32_v17 }
  0x12   :  { %v35_v21 = vsel %vm34_vm1, %v176_v10, %v33_v18 }
  0x14   :  { %117 = vmatpush.bf16.xpose.msra.mxu0 %v103_v16 }
  0x1c   :  { %118 = vmatpush.bf16.xpose.msra.mxu0 %v100_v20 }
  0x7a   :  { %v25_v22 = vpop.xlane.xlu0 %24 }
  0x7b   :  { %v36_v23 = vmul.f32 %v35_v21, %v25_v22 }
  0x7d   :  { %v38_v24 = vadd.f32 1e-06, %v36_v23 }
  0x7f   :  { %177 = vrsqrt.f32 %v38_v24  ;;  %vm46_vm3 = vweird.f32 %v38_v24 }
  0x82   :  { %v28_v25 = vpop.xlane.xlu0 %27 }
  0x83   :  { %v37_v26 = vmul.f32 %v35_v21, %v28_v25 }
  0x85   :  { %v178_v27 = vpop.eup %177  ;;  %v39_v28 = vadd.f32 1e-06, %v37_v26 }
  0x86   :  { %v41_v29 = vmul.f32 %v178_v27, %v38_v24  ;;  %vm47_vm2 = vweird.f32 %v178_v27 }
  0x87   :  { %179 = vrsqrt.f32 %v39_v28  ;;  %vm48_vm4 = vmor %vm46_vm3, %vm47_vm2  ;;  %vm56_vm6 = vweird.f32 %v39_v28 }
  0x88   :  { %v42_v30 = vmul.f32 %v178_v27, %v41_v29 }
  0x8a   :  { %v43_v31 = vmul.f32 0.5, %v42_v30 }
  0x8c   :  { %v44_v32 = vsub.f32 1.5, %v43_v31 }
  0x8d   :  { %v180_v33 = vpop.eup %179 }
  0x8e   :  { %v51_v34 = vmul.f32 %v180_v33, %v39_v28  ;;  %v45_v35 = vmul.f32 %v178_v27, %v44_v32  ;;  %vm57_vm5 = vweird.f32 %v180_v33 }
  0x8f   :  { %vm58_vm7 = vmor %vm56_vm6, %vm57_vm5 }
  0x90   :  { %v52_v36 = vmul.f32 %v180_v33, %v51_v34  ;;  %v49_v40 = vsel %vm48_vm4, %v178_v27, %v45_v35 }
  0x91   :  { %v60_v43 = vmul.f32 %v169_v1, %v49_v40 }
  0x92   :  { %v53_v38 = vmul.f32 0.5, %v52_v36 }
  0x93   :  { %v65_v47 = vmul.f32 %v64_v44, %v60_v43 }
  0x94   :  { %v54_v41 = vsub.f32 1.5, %v53_v38 }
  0x96   :  { %v55_v42 = vmul.f32 %v180_v33, %v54_v41 }
  0x98   :  { %v59_v45 = vsel %vm58_vm7, %v180_v33, %v55_v42 }
  0x99   :  { %v61_v46 = vmul.f32 %v170_v3, %v59_v45 }
  0x9b   :  { %v66_v48 = vmul.f32 %v64_v44, %v61_v46 }
  0x9d   :  { %v67_v49 = vpack.c.bf16 %v66_v48, %v65_v47 }
  0x9f   :  { %162 = vmatmul.msk.bf16.vlgmr.msra.gmra.mxu0 %vm22_vm0, %v67_v49 }
 0x11c   :  { %v120_v50 = vpop.f32.mrf.mxu0 }
 0x11d   :  { %126 = vst.msk [vmem:[#allocation2] sm:$0xff] %vm125_vm8, %v120_v50 }
 0x124   :  { %v122_v51 = vpop.f32.mrf.mxu0 }
 0x125   :  { %127 = vst.msk [vmem:[#allocation2 + $0x8] sm:$0xff] %vm125_vm8, %v122_v51 }
 0x126   :  { %140 = dma.vmem_to_hbm [thread:$0]  %s133_s22, 256, %s135_s25, [#allocation3], %s209_s26, %s209_s26, %s210_s27  }
 0x127   :  { %205 = dma.done.wait [#allocation3], 256  }
 0x128   :  { %206 = vsyncadd [#allocation3], 4294967040 }
 0x129   :  { %145 = vsyncpa [#allocation3], 1 }

</bundles_post_ra>
